<compile_context>
chip_gen: v5e
topology: v5e:2x2
jax: 0.10.0
libtpu: 0.0.40
codegen_flags: <defaults>
</compile_context>

<pallas_src>
import functools

import jax
import jax.numpy as jnp
from jax.experimental import pallas as pl
from jax.experimental.pallas import tpu as pltpu

LANE = 128


def _lstm_head_kernel(x_ref, wih_ref, whh_ref, b_ref, w_head_ref, b_head_ref,
                      out_ref, *, seq, batch, hidden_pad):
    H = hidden_pad  # multiple of 128 -> all gate slices below are vreg-aligned

    # Input projection for ALL timesteps at once (no dependence on h):
    # (seq*B, In) @ (In, 4H) + (1, 4H)  ->  (seq*B, 4H)
    gx = (jnp.dot(x_ref[...], wih_ref[...], preferred_element_type=jnp.float32)
          + b_ref[...])

    whh = whh_ref[...]                              # (H, 4H)

    h = jnp.zeros((batch, H), jnp.float32)
    c = jnp.zeros((batch, H), jnp.float32)

    # `seq` is a static Python int -> the loop fully unrolls at trace time,
    # so every slice below is static.
    for t in range(seq):
        g_x = gx[t * batch:(t + 1) * batch]         # (B, 4H)
        if t == 0:
            gates = g_x                             # h == 0 at the first step
        else:
            gates = g_x + jnp.dot(h, whh, preferred_element_type=jnp.float32)

        i_g = jax.nn.sigmoid(gates[:, 0 * H:1 * H])  # 128-lane aligned slices
        f_g = jax.nn.sigmoid(gates[:, 1 * H:2 * H])
        g_g = jnp.tanh(gates[:, 2 * H:3 * H])
        o_g = jax.nn.sigmoid(gates[:, 3 * H:4 * H])

        c = f_g * c + i_g * g_g
        h = o_g * jnp.tanh(c)

    # Fused head (Linear∘Linear, dropout = identity at inference), on VPU/XLU:
    # z = h @ (W1 @ W2) + (b1 @ W2 + b2)
    z = jnp.sum(h * w_head_ref[...], axis=-1, keepdims=True) + b_head_ref[...]
    out_ref[...] = z.astype(out_ref.dtype)


def prepare_params(params):
    """One-time layout transform (wrapper side, not in the hot path)."""
    wih, whh, b = params["wih"], params["whh"], params["b"]
    w1, b1, w2, b2 = params["w1"], params["b1"], params["w2"], params["b2"]
    h1 = whh.shape[0]
    hp = ((h1 + LANE - 1) // LANE) * LANE
    pad = hp - h1

    def pad_gate_cols(m):  # (..., 4*h1) -> (..., 4*hp), each gate block padded
        chunks = jnp.split(m, 4, axis=-1)
        widths = [(0, 0)] * (m.ndim - 1) + [(0, pad)]
        return jnp.concatenate([jnp.pad(ch, widths) for ch in chunks], axis=-1)

    # Exact fusion of Linear(H1->H2) then Linear(H2->1): no activation between
    # them and Dropout is identity at inference time.
    w_head = w1 @ w2                                  # (H1, 1)
    b_head = b1 @ w2 + b2                             # (1, 1)

    return {
        "wih": pad_gate_cols(wih),                                # (In, 4*Hp)
        "whh": pad_gate_cols(jnp.pad(whh, ((0, pad), (0, 0)))),   # (Hp, 4*Hp)
        "b": pad_gate_cols(b),                                    # (1, 4*Hp)
        "w_head": jnp.pad(w_head.T, ((0, 0), (0, pad))),          # (1, Hp)
        "b_head": b_head,                                         # (1, 1)
        "hidden_pad": hp,
    }


def mylstm2_forward(features, prepped):
    """features: (seq, batch, input_size) float32 -> (batch, 1) float32."""
    seq, batch, in_size = features.shape
    hp = prepped["hidden_pad"]
    x2d = features.reshape(seq * batch, in_size)   # layout-only, done in XLA

    kernel = functools.partial(_lstm_head_kernel, seq=seq, batch=batch,
                               hidden_pad=hp)

    def full(shape):
        return pl.BlockSpec(shape, lambda i: (0,) * len(shape))

    return pl.pallas_call(
        kernel,
        out_shape=jax.ShapeDtypeStruct((batch, 1), jnp.float32),
        grid_spec=pltpu.PrefetchScalarGridSpec(
            num_scalar_prefetch=0,
            grid=(1,),  # single invocation; recurrence is unrolled in-kernel
            in_specs=[
                full(x2d.shape),
                full(prepped["wih"].shape),
                full(prepped["whh"].shape),
                full(prepped["b"].shape),
                full(prepped["w_head"].shape),
                full(prepped["b_head"].shape),
            ],
            out_specs=pl.BlockSpec((batch, 1), lambda i: (0, 0)),
        ),
        compiler_params=pltpu.CompilerParams(
            dimension_semantics=("arbitrary",),
        ),
    )(x2d, prepped["wih"], prepped["whh"], prepped["b"],
      prepped["w_head"], prepped["b_head"])


def init_params(key, input_size, hidden1, hidden2):
    ks = jax.random.split(key, 8)
    u = lambda k, shape, s: jax.random.uniform(k, shape, jnp.float32, -s, s)
    s1 = 1.0 / jnp.sqrt(hidden1)
    s2 = 1.0 / jnp.sqrt(hidden2)
    # PyTorch stores weight_ih_l0 as (4*H1, In); we keep the transposed layout.
    return {
        "wih": u(ks[0], (input_size, 4 * hidden1), s1),
        "whh": u(ks[1], (hidden1, 4 * hidden1), s1),
        "b": u(ks[2], (1, 4 * hidden1), s1) + u(ks[3], (1, 4 * hidden1), s1),
        "w1": u(ks[4], (hidden1, hidden2), s1),
        "b1": u(ks[5], (1, hidden2), s1),
        "w2": u(ks[6], (hidden2, 1), s2),
        "b2": u(ks[7], (1, 1), s2),
    }


def reference_forward(features, params):
    """Pure-JAX reference of the original (unfused, unpadded) math."""
    seq, batch, _ = features.shape
    H = params["whh"].shape[0]
    h = jnp.zeros((batch, H), jnp.float32)
    c = jnp.zeros((batch, H), jnp.float32)
    for t in range(seq):
        gates = features[t] @ params["wih"] + h @ params["whh"] + params["b"]
        i = jax.nn.sigmoid(gates[:, 0 * H:1 * H])
        f = jax.nn.sigmoid(gates[:, 1 * H:2 * H])
        g = jnp.tanh(gates[:, 2 * H:3 * H])
        o = jax.nn.sigmoid(gates[:, 3 * H:4 * H])
        c = f * c + i * g
        h = o * jnp.tanh(c)
    z1 = h @ params["w1"] + params["b1"]   # dropout = identity at inference
    return z1 @ params["w2"] + params["b2"]


if __name__ == "__main__":
    SEQ, BATCH, INPUT_SIZE, HIDDEN1, HIDDEN2 = 8, 2, 4, 32, 16

    key = jax.random.PRNGKey(0)
    k_x, k_p = jax.random.split(key)
    features = jax.random.normal(k_x, (SEQ, BATCH, INPUT_SIZE), jnp.float32)
    params = init_params(k_p, INPUT_SIZE, HIDDEN1, HIDDEN2)

    prepped = prepare_params(params)          # one-time layout transform
    pred = mylstm2_forward(features, prepped)
    pred = jax.block_until_ready(pred)

    ref = reference_forward(features, params)
    assert pred.shape == (BATCH, 1)
    assert jnp.allclose(pred, ref, atol=1e-5, rtol=1e-5)

    print("KERNEL_OK")
</pallas_src>

<mosaic_0001>
module attributes {stable_mosaic.version = 11 : i64} {
  func.func @_lstm_head_kernel(%arg0: i32, %arg1: memref<16x4xf32, #tpu.memory_space<vmem>>, %arg2: memref<4x512xf32, #tpu.memory_space<vmem>>, %arg3: memref<128x512xf32, #tpu.memory_space<vmem>>, %arg4: memref<1x512xf32, #tpu.memory_space<vmem>>, %arg5: memref<1x128xf32, #tpu.memory_space<vmem>>, %arg6: memref<1x1xf32, #tpu.memory_space<vmem>>, %arg7: memref<2x1xf32, #tpu.memory_space<vmem>>) attributes {dimension_semantics = [#tpu.dimension_semantics<arbitrary>], iteration_bounds = array<i64: 1>, scalar_prefetch = 0 : i64, scratch_operands = 0 : i64, tpu.core_type = #tpu.core_type<tc>, window_params = [{pipeline_mode = #tpu.pipeline_mode<synchronous>, transform_indices = @transform_0, window_bounds = array<i64: 16, 4>}, {pipeline_mode = #tpu.pipeline_mode<synchronous>, transform_indices = @transform_1, window_bounds = array<i64: 4, 512>}, {pipeline_mode = #tpu.pipeline_mode<synchronous>, transform_indices = @transform_2, window_bounds = array<i64: 128, 512>}, {pipeline_mode = #tpu.pipeline_mode<synchronous>, transform_indices = @transform_3, window_bounds = array<i64: 1, 512>}, {pipeline_mode = #tpu.pipeline_mode<synchronous>, transform_indices = @transform_4, window_bounds = array<i64: 1, 128>}, {pipeline_mode = #tpu.pipeline_mode<synchronous>, transform_indices = @transform_5, window_bounds = array<i64: 1, 1>}, {pipeline_mode = #tpu.pipeline_mode<synchronous>, transform_indices = @transform_6, window_bounds = array<i64: 2, 1>}]} {
    %c0 = arith.constant 0 : index
    %c0_0 = arith.constant 0 : index
    %0 = vector.load %arg1[%c0, %c0_0] : memref<16x4xf32, #tpu.memory_space<vmem>>, vector<16x4xf32>
    %c0_1 = arith.constant 0 : index
    %c0_2 = arith.constant 0 : index
    %1 = vector.load %arg2[%c0_1, %c0_2] : memref<4x512xf32, #tpu.memory_space<vmem>>, vector<4x512xf32>
    %cst = arith.constant dense<0.000000e+00> : vector<16x512xf32>
    %2 = tpu.matmul %0, %1, %cst {dimension_numbers = #tpu.dot_dimension_numbers<[1], [0], [0], [1], [0, 0, 1, 1], [], []>} : vector<16x4xf32>, vector<4x512xf32>, vector<16x512xf32> -> vector<16x512xf32>
    %c0_3 = arith.constant 0 : index
    %c0_4 = arith.constant 0 : index
    %3 = vector.load %arg4[%c0_3, %c0_4] : memref<1x512xf32, #tpu.memory_space<vmem>>, vector<1x512xf32>
    %4 = vector.broadcast %3 : vector<1x512xf32> to vector<16x512xf32>
    %5 = arith.addf %2, %4 : vector<16x512xf32>
    %c0_5 = arith.constant 0 : index
    %c0_6 = arith.constant 0 : index
    %6 = vector.load %arg3[%c0_5, %c0_6] : memref<128x512xf32, #tpu.memory_space<vmem>>, vector<128x512xf32>
    %cst_7 = arith.constant 0.000000e+00 : f32
    %7 = vector.broadcast %cst_7 : f32 to vector<2x128xf32>
    %8 = vector.extract_strided_slice %5 {offsets = [0, 0], sizes = [2, 512], strides = [1, 1]} : vector<16x512xf32> to vector<2x512xf32>
    %9 = vector.extract_strided_slice %8 {offsets = [0, 0], sizes = [2, 128], strides = [1, 1]} : vector<2x512xf32> to vector<2x128xf32>
    %10 = arith.negf %9 : vector<2x128xf32>
    %11 = math.exp %10 : vector<2x128xf32>
    %cst_8 = arith.constant 1.000000e+00 : f32
    %12 = vector.broadcast %cst_8 : f32 to vector<2x128xf32>
    %13 = arith.addf %12, %11 : vector<2x128xf32>
    %14 = arith.divf %12, %13 : vector<2x128xf32>
    %15 = vector.extract_strided_slice %8 {offsets = [0, 128], sizes = [2, 128], strides = [1, 1]} : vector<2x512xf32> to vector<2x128xf32>
    %16 = arith.negf %15 : vector<2x128xf32>
    %17 = math.exp %16 : vector<2x128xf32>
    %cst_9 = arith.constant 1.000000e+00 : f32
    %18 = vector.broadcast %cst_9 : f32 to vector<2x128xf32>
    %19 = arith.addf %18, %17 : vector<2x128xf32>
    %20 = arith.divf %18, %19 : vector<2x128xf32>
    %21 = vector.extract_strided_slice %8 {offsets = [0, 256], sizes = [2, 128], strides = [1, 1]} : vector<2x512xf32> to vector<2x128xf32>
    %22 = math.tanh %21 : vector<2x128xf32>
    %23 = vector.extract_strided_slice %8 {offsets = [0, 384], sizes = [2, 128], strides = [1, 1]} : vector<2x512xf32> to vector<2x128xf32>
    %24 = arith.negf %23 : vector<2x128xf32>
    %25 = math.exp %24 : vector<2x128xf32>
    %cst_10 = arith.constant 1.000000e+00 : f32
    %26 = vector.broadcast %cst_10 : f32 to vector<2x128xf32>
    %27 = arith.addf %26, %25 : vector<2x128xf32>
    %28 = arith.divf %26, %27 : vector<2x128xf32>
    %29 = arith.mulf %20, %7 : vector<2x128xf32>
    %30 = arith.mulf %14, %22 : vector<2x128xf32>
    %31 = arith.addf %29, %30 : vector<2x128xf32>
    %32 = math.tanh %31 : vector<2x128xf32>
    %33 = arith.mulf %28, %32 : vector<2x128xf32>
    %34 = vector.extract_strided_slice %5 {offsets = [2, 0], sizes = [2, 512], strides = [1, 1]} : vector<16x512xf32> to vector<2x512xf32>
    %cst_11 = arith.constant dense<0.000000e+00> : vector<2x512xf32>
    %35 = tpu.matmul %33, %6, %cst_11 {dimension_numbers = #tpu.dot_dimension_numbers<[1], [0], [0], [1], [0, 0, 1, 1], [], []>} : vector<2x128xf32>, vector<128x512xf32>, vector<2x512xf32> -> vector<2x512xf32>
    %36 = arith.addf %34, %35 : vector<2x512xf32>
    %37 = vector.extract_strided_slice %36 {offsets = [0, 0], sizes = [2, 128], strides = [1, 1]} : vector<2x512xf32> to vector<2x128xf32>
    %38 = arith.negf %37 : vector<2x128xf32>
    %39 = math.exp %38 : vector<2x128xf32>
    %cst_12 = arith.constant 1.000000e+00 : f32
    %40 = vector.broadcast %cst_12 : f32 to vector<2x128xf32>
    %41 = arith.addf %40, %39 : vector<2x128xf32>
    %42 = arith.divf %40, %41 : vector<2x128xf32>
    %43 = vector.extract_strided_slice %36 {offsets = [0, 128], sizes = [2, 128], strides = [1, 1]} : vector<2x512xf32> to vector<2x128xf32>
    %44 = arith.negf %43 : vector<2x128xf32>
    %45 = math.exp %44 : vector<2x128xf32>
    %cst_13 = arith.constant 1.000000e+00 : f32
    %46 = vector.broadcast %cst_13 : f32 to vector<2x128xf32>
    %47 = arith.addf %46, %45 : vector<2x128xf32>
    %48 = arith.divf %46, %47 : vector<2x128xf32>
    %49 = vector.extract_strided_slice %36 {offsets = [0, 256], sizes = [2, 128], strides = [1, 1]} : vector<2x512xf32> to vector<2x128xf32>
    %50 = math.tanh %49 : vector<2x128xf32>
    %51 = vector.extract_strided_slice %36 {offsets = [0, 384], sizes = [2, 128], strides = [1, 1]} : vector<2x512xf32> to vector<2x128xf32>
    %52 = arith.negf %51 : vector<2x128xf32>
    %53 = math.exp %52 : vector<2x128xf32>
    %cst_14 = arith.constant 1.000000e+00 : f32
    %54 = vector.broadcast %cst_14 : f32 to vector<2x128xf32>
    %55 = arith.addf %54, %53 : vector<2x128xf32>
    %56 = arith.divf %54, %55 : vector<2x128xf32>
    %57 = arith.mulf %48, %31 : vector<2x128xf32>
    %58 = arith.mulf %42, %50 : vector<2x128xf32>
    %59 = arith.addf %57, %58 : vector<2x128xf32>
    %60 = math.tanh %59 : vector<2x128xf32>
    %61 = arith.mulf %56, %60 : vector<2x128xf32>
    %62 = vector.extract_strided_slice %5 {offsets = [4, 0], sizes = [2, 512], strides = [1, 1]} : vector<16x512xf32> to vector<2x512xf32>
    %cst_15 = arith.constant dense<0.000000e+00> : vector<2x512xf32>
    %63 = tpu.matmul %61, %6, %cst_15 {dimension_numbers = #tpu.dot_dimension_numbers<[1], [0], [0], [1], [0, 0, 1, 1], [], []>} : vector<2x128xf32>, vector<128x512xf32>, vector<2x512xf32> -> vector<2x512xf32>
    %64 = arith.addf %62, %63 : vector<2x512xf32>
    %65 = vector.extract_strided_slice %64 {offsets = [0, 0], sizes = [2, 128], strides = [1, 1]} : vector<2x512xf32> to vector<2x128xf32>
    %66 = arith.negf %65 : vector<2x128xf32>
    %67 = math.exp %66 : vector<2x128xf32>
    %cst_16 = arith.constant 1.000000e+00 : f32
    %68 = vector.broadcast %cst_16 : f32 to vector<2x128xf32>
    %69 = arith.addf %68, %67 : vector<2x128xf32>
    %70 = arith.divf %68, %69 : vector<2x128xf32>
    %71 = vector.extract_strided_slice %64 {offsets = [0, 128], sizes = [2, 128], strides = [1, 1]} : vector<2x512xf32> to vector<2x128xf32>
    %72 = arith.negf %71 : vector<2x128xf32>
    %73 = math.exp %72 : vector<2x128xf32>
    %cst_17 = arith.constant 1.000000e+00 : f32
    %74 = vector.broadcast %cst_17 : f32 to vector<2x128xf32>
    %75 = arith.addf %74, %73 : vector<2x128xf32>
    %76 = arith.divf %74, %75 : vector<2x128xf32>
    %77 = vector.extract_strided_slice %64 {offsets = [0, 256], sizes = [2, 128], strides = [1, 1]} : vector<2x512xf32> to vector<2x128xf32>
    %78 = math.tanh %77 : vector<2x128xf32>
    %79 = vector.extract_strided_slice %64 {offsets = [0, 384], sizes = [2, 128], strides = [1, 1]} : vector<2x512xf32> to vector<2x128xf32>
    %80 = arith.negf %79 : vector<2x128xf32>
    %81 = math.exp %80 : vector<2x128xf32>
    %cst_18 = arith.constant 1.000000e+00 : f32
    %82 = vector.broadcast %cst_18 : f32 to vector<2x128xf32>
    %83 = arith.addf %82, %81 : vector<2x128xf32>
    %84 = arith.divf %82, %83 : vector<2x128xf32>
    %85 = arith.mulf %76, %59 : vector<2x128xf32>
    %86 = arith.mulf %70, %78 : vector<2x128xf32>
    %87 = arith.addf %85, %86 : vector<2x128xf32>
    %88 = math.tanh %87 : vector<2x128xf32>
    %89 = arith.mulf %84, %88 : vector<2x128xf32>
    %90 = vector.extract_strided_slice %5 {offsets = [6, 0], sizes = [2, 512], strides = [1, 1]} : vector<16x512xf32> to vector<2x512xf32>
    %cst_19 = arith.constant dense<0.000000e+00> : vector<2x512xf32>
    %91 = tpu.matmul %89, %6, %cst_19 {dimension_numbers = #tpu.dot_dimension_numbers<[1], [0], [0], [1], [0, 0, 1, 1], [], []>} : vector<2x128xf32>, vector<128x512xf32>, vector<2x512xf32> -> vector<2x512xf32>
    %92 = arith.addf %90, %91 : vector<2x512xf32>
    %93 = vector.extract_strided_slice %92 {offsets = [0, 0], sizes = [2, 128], strides = [1, 1]} : vector<2x512xf32> to vector<2x128xf32>
    %94 = arith.negf %93 : vector<2x128xf32>
    %95 = math.exp %94 : vector<2x128xf32>
    %cst_20 = arith.constant 1.000000e+00 : f32
    %96 = vector.broadcast %cst_20 : f32 to vector<2x128xf32>
    %97 = arith.addf %96, %95 : vector<2x128xf32>
    %98 = arith.divf %96, %97 : vector<2x128xf32>
    %99 = vector.extract_strided_slice %92 {offsets = [0, 128], sizes = [2, 128], strides = [1, 1]} : vector<2x512xf32> to vector<2x128xf32>
    %100 = arith.negf %99 : vector<2x128xf32>
    %101 = math.exp %100 : vector<2x128xf32>
    %cst_21 = arith.constant 1.000000e+00 : f32
    %102 = vector.broadcast %cst_21 : f32 to vector<2x128xf32>
    %103 = arith.addf %102, %101 : vector<2x128xf32>
    %104 = arith.divf %102, %103 : vector<2x128xf32>
    %105 = vector.extract_strided_slice %92 {offsets = [0, 256], sizes = [2, 128], strides = [1, 1]} : vector<2x512xf32> to vector<2x128xf32>
    %106 = math.tanh %105 : vector<2x128xf32>
    %107 = vector.extract_strided_slice %92 {offsets = [0, 384], sizes = [2, 128], strides = [1, 1]} : vector<2x512xf32> to vector<2x128xf32>
    %108 = arith.negf %107 : vector<2x128xf32>
    %109 = math.exp %108 : vector<2x128xf32>
    %cst_22 = arith.constant 1.000000e+00 : f32
    %110 = vector.broadcast %cst_22 : f32 to vector<2x128xf32>
    %111 = arith.addf %110, %109 : vector<2x128xf32>
    %112 = arith.divf %110, %111 : vector<2x128xf32>
    %113 = arith.mulf %104, %87 : vector<2x128xf32>
    %114 = arith.mulf %98, %106 : vector<2x128xf32>
    %115 = arith.addf %113, %114 : vector<2x128xf32>
    %116 = math.tanh %115 : vector<2x128xf32>
    %117 = arith.mulf %112, %116 : vector<2x128xf32>
    %118 = vector.extract_strided_slice %5 {offsets = [8, 0], sizes = [2, 512], strides = [1, 1]} : vector<16x512xf32> to vector<2x512xf32>
    %cst_23 = arith.constant dense<0.000000e+00> : vector<2x512xf32>
    %119 = tpu.matmul %117, %6, %cst_23 {dimension_numbers = #tpu.dot_dimension_numbers<[1], [0], [0], [1], [0, 0, 1, 1], [], []>} : vector<2x128xf32>, vector<128x512xf32>, vector<2x512xf32> -> vector<2x512xf32>
    %120 = arith.addf %118, %119 : vector<2x512xf32>
    %121 = vector.extract_strided_slice %120 {offsets = [0, 0], sizes = [2, 128], strides = [1, 1]} : vector<2x512xf32> to vector<2x128xf32>
    %122 = arith.negf %121 : vector<2x128xf32>
    %123 = math.exp %122 : vector<2x128xf32>
    %cst_24 = arith.constant 1.000000e+00 : f32
    %124 = vector.broadcast %cst_24 : f32 to vector<2x128xf32>
    %125 = arith.addf %124, %123 : vector<2x128xf32>
    %126 = arith.divf %124, %125 : vector<2x128xf32>
    %127 = vector.extract_strided_slice %120 {offsets = [0, 128], sizes = [2, 128], strides = [1, 1]} : vector<2x512xf32> to vector<2x128xf32>
    %128 = arith.negf %127 : vector<2x128xf32>
    %129 = math.exp %128 : vector<2x128xf32>
    %cst_25 = arith.constant 1.000000e+00 : f32
    %130 = vector.broadcast %cst_25 : f32 to vector<2x128xf32>
    %131 = arith.addf %130, %129 : vector<2x128xf32>
    %132 = arith.divf %130, %131 : vector<2x128xf32>
    %133 = vector.extract_strided_slice %120 {offsets = [0, 256], sizes = [2, 128], strides = [1, 1]} : vector<2x512xf32> to vector<2x128xf32>
    %134 = math.tanh %133 : vector<2x128xf32>
    %135 = vector.extract_strided_slice %120 {offsets = [0, 384], sizes = [2, 128], strides = [1, 1]} : vector<2x512xf32> to vector<2x128xf32>
    %136 = arith.negf %135 : vector<2x128xf32>
    %137 = math.exp %136 : vector<2x128xf32>
    %cst_26 = arith.constant 1.000000e+00 : f32
    %138 = vector.broadcast %cst_26 : f32 to vector<2x128xf32>
    %139 = arith.addf %138, %137 : vector<2x128xf32>
    %140 = arith.divf %138, %139 : vector<2x128xf32>
    %141 = arith.mulf %132, %115 : vector<2x128xf32>
    %142 = arith.mulf %126, %134 : vector<2x128xf32>
    %143 = arith.addf %141, %142 : vector<2x128xf32>
    %144 = math.tanh %143 : vector<2x128xf32>
    %145 = arith.mulf %140, %144 : vector<2x128xf32>
    %146 = vector.extract_strided_slice %5 {offsets = [10, 0], sizes = [2, 512], strides = [1, 1]} : vector<16x512xf32> to vector<2x512xf32>
    %cst_27 = arith.constant dense<0.000000e+00> : vector<2x512xf32>
    %147 = tpu.matmul %145, %6, %cst_27 {dimension_numbers = #tpu.dot_dimension_numbers<[1], [0], [0], [1], [0, 0, 1, 1], [], []>} : vector<2x128xf32>, vector<128x512xf32>, vector<2x512xf32> -> vector<2x512xf32>
    %148 = arith.addf %146, %147 : vector<2x512xf32>
    %149 = vector.extract_strided_slice %148 {offsets = [0, 0], sizes = [2, 128], strides = [1, 1]} : vector<2x512xf32> to vector<2x128xf32>
    %150 = arith.negf %149 : vector<2x128xf32>
    %151 = math.exp %150 : vector<2x128xf32>
    %cst_28 = arith.constant 1.000000e+00 : f32
    %152 = vector.broadcast %cst_28 : f32 to vector<2x128xf32>
    %153 = arith.addf %152, %151 : vector<2x128xf32>
    %154 = arith.divf %152, %153 : vector<2x128xf32>
    %155 = vector.extract_strided_slice %148 {offsets = [0, 128], sizes = [2, 128], strides = [1, 1]} : vector<2x512xf32> to vector<2x128xf32>
    %156 = arith.negf %155 : vector<2x128xf32>
    %157 = math.exp %156 : vector<2x128xf32>
    %cst_29 = arith.constant 1.000000e+00 : f32
    %158 = vector.broadcast %cst_29 : f32 to vector<2x128xf32>
    %159 = arith.addf %158, %157 : vector<2x128xf32>
    %160 = arith.divf %158, %159 : vector<2x128xf32>
    %161 = vector.extract_strided_slice %148 {offsets = [0, 256], sizes = [2, 128], strides = [1, 1]} : vector<2x512xf32> to vector<2x128xf32>
    %162 = math.tanh %161 : vector<2x128xf32>
    %163 = vector.extract_strided_slice %148 {offsets = [0, 384], sizes = [2, 128], strides = [1, 1]} : vector<2x512xf32> to vector<2x128xf32>
    %164 = arith.negf %163 : vector<2x128xf32>
    %165 = math.exp %164 : vector<2x128xf32>
    %cst_30 = arith.constant 1.000000e+00 : f32
    %166 = vector.broadcast %cst_30 : f32 to vector<2x128xf32>
    %167 = arith.addf %166, %165 : vector<2x128xf32>
    %168 = arith.divf %166, %167 : vector<2x128xf32>
    %169 = arith.mulf %160, %143 : vector<2x128xf32>
    %170 = arith.mulf %154, %162 : vector<2x128xf32>
    %171 = arith.addf %169, %170 : vector<2x128xf32>
    %172 = math.tanh %171 : vector<2x128xf32>
    %173 = arith.mulf %168, %172 : vector<2x128xf32>
    %174 = vector.extract_strided_slice %5 {offsets = [12, 0], sizes = [2, 512], strides = [1, 1]} : vector<16x512xf32> to vector<2x512xf32>
    %cst_31 = arith.constant dense<0.000000e+00> : vector<2x512xf32>
    %175 = tpu.matmul %173, %6, %cst_31 {dimension_numbers = #tpu.dot_dimension_numbers<[1], [0], [0], [1], [0, 0, 1, 1], [], []>} : vector<2x128xf32>, vector<128x512xf32>, vector<2x512xf32> -> vector<2x512xf32>
    %176 = arith.addf %174, %175 : vector<2x512xf32>
    %177 = vector.extract_strided_slice %176 {offsets = [0, 0], sizes = [2, 128], strides = [1, 1]} : vector<2x512xf32> to vector<2x128xf32>
    %178 = arith.negf %177 : vector<2x128xf32>
    %179 = math.exp %178 : vector<2x128xf32>
    %cst_32 = arith.constant 1.000000e+00 : f32
    %180 = vector.broadcast %cst_32 : f32 to vector<2x128xf32>
    %181 = arith.addf %180, %179 : vector<2x128xf32>
    %182 = arith.divf %180, %181 : vector<2x128xf32>
    %183 = vector.extract_strided_slice %176 {offsets = [0, 128], sizes = [2, 128], strides = [1, 1]} : vector<2x512xf32> to vector<2x128xf32>
    %184 = arith.negf %183 : vector<2x128xf32>
    %185 = math.exp %184 : vector<2x128xf32>
    %cst_33 = arith.constant 1.000000e+00 : f32
    %186 = vector.broadcast %cst_33 : f32 to vector<2x128xf32>
    %187 = arith.addf %186, %185 : vector<2x128xf32>
    %188 = arith.divf %186, %187 : vector<2x128xf32>
    %189 = vector.extract_strided_slice %176 {offsets = [0, 256], sizes = [2, 128], strides = [1, 1]} : vector<2x512xf32> to vector<2x128xf32>
    %190 = math.tanh %189 : vector<2x128xf32>
    %191 = vector.extract_strided_slice %176 {offsets = [0, 384], sizes = [2, 128], strides = [1, 1]} : vector<2x512xf32> to vector<2x128xf32>
    %192 = arith.negf %191 : vector<2x128xf32>
    %193 = math.exp %192 : vector<2x128xf32>
    %cst_34 = arith.constant 1.000000e+00 : f32
    %194 = vector.broadcast %cst_34 : f32 to vector<2x128xf32>
    %195 = arith.addf %194, %193 : vector<2x128xf32>
    %196 = arith.divf %194, %195 : vector<2x128xf32>
    %197 = arith.mulf %188, %171 : vector<2x128xf32>
    %198 = arith.mulf %182, %190 : vector<2x128xf32>
    %199 = arith.addf %197, %198 : vector<2x128xf32>
    %200 = math.tanh %199 : vector<2x128xf32>
    %201 = arith.mulf %196, %200 : vector<2x128xf32>
    %202 = vector.extract_strided_slice %5 {offsets = [14, 0], sizes = [2, 512], strides = [1, 1]} : vector<16x512xf32> to vector<2x512xf32>
    %cst_35 = arith.constant dense<0.000000e+00> : vector<2x512xf32>
    %203 = tpu.matmul %201, %6, %cst_35 {dimension_numbers = #tpu.dot_dimension_numbers<[1], [0], [0], [1], [0, 0, 1, 1], [], []>} : vector<2x128xf32>, vector<128x512xf32>, vector<2x512xf32> -> vector<2x512xf32>
    %204 = arith.addf %202, %203 : vector<2x512xf32>
    %205 = vector.extract_strided_slice %204 {offsets = [0, 0], sizes = [2, 128], strides = [1, 1]} : vector<2x512xf32> to vector<2x128xf32>
    %206 = arith.negf %205 : vector<2x128xf32>
    %207 = math.exp %206 : vector<2x128xf32>
    %cst_36 = arith.constant 1.000000e+00 : f32
    %208 = vector.broadcast %cst_36 : f32 to vector<2x128xf32>
    %209 = arith.addf %208, %207 : vector<2x128xf32>
    %210 = arith.divf %208, %209 : vector<2x128xf32>
    %211 = vector.extract_strided_slice %204 {offsets = [0, 128], sizes = [2, 128], strides = [1, 1]} : vector<2x512xf32> to vector<2x128xf32>
    %212 = arith.negf %211 : vector<2x128xf32>
    %213 = math.exp %212 : vector<2x128xf32>
    %cst_37 = arith.constant 1.000000e+00 : f32
    %214 = vector.broadcast %cst_37 : f32 to vector<2x128xf32>
    %215 = arith.addf %214, %213 : vector<2x128xf32>
    %216 = arith.divf %214, %215 : vector<2x128xf32>
    %217 = vector.extract_strided_slice %204 {offsets = [0, 256], sizes = [2, 128], strides = [1, 1]} : vector<2x512xf32> to vector<2x128xf32>
    %218 = math.tanh %217 : vector<2x128xf32>
    %219 = vector.extract_strided_slice %204 {offsets = [0, 384], sizes = [2, 128], strides = [1, 1]} : vector<2x512xf32> to vector<2x128xf32>
    %220 = arith.negf %219 : vector<2x128xf32>
    %221 = math.exp %220 : vector<2x128xf32>
    %cst_38 = arith.constant 1.000000e+00 : f32
    %222 = vector.broadcast %cst_38 : f32 to vector<2x128xf32>
    %223 = arith.addf %222, %221 : vector<2x128xf32>
    %224 = arith.divf %222, %223 : vector<2x128xf32>
    %225 = arith.mulf %216, %199 : vector<2x128xf32>
    %226 = arith.mulf %210, %218 : vector<2x128xf32>
    %227 = arith.addf %225, %226 : vector<2x128xf32>
    %228 = math.tanh %227 : vector<2x128xf32>
    %229 = arith.mulf %224, %228 : vector<2x128xf32>
    %c0_39 = arith.constant 0 : index
    %c0_40 = arith.constant 0 : index
    %230 = vector.load %arg5[%c0_39, %c0_40] : memref<1x128xf32, #tpu.memory_space<vmem>>, vector<1x128xf32>
    %231 = vector.broadcast %230 : vector<1x128xf32> to vector<2x128xf32>
    %232 = arith.mulf %229, %231 : vector<2x128xf32>
    %cst_41 = arith.constant dense<0.000000e+00> : vector<2xf32>
    %233 = vector.multi_reduction <add>, %232, %cst_41 [1] : vector<2x128xf32> to vector<2xf32>
    %234 = vector.shape_cast %233 : vector<2xf32> to vector<2x1xf32>
    %c0_42 = arith.constant 0 : index
    %c0_43 = arith.constant 0 : index
    %235 = vector.load %arg6[%c0_42, %c0_43] : memref<1x1xf32, #tpu.memory_space<vmem>>, vector<1x1xf32>
    %236 = vector.broadcast %235 : vector<1x1xf32> to vector<2x1xf32>
    %237 = arith.addf %234, %236 : vector<2x1xf32>
    %c0_44 = arith.constant 0 : index
    %c0_45 = arith.constant 0 : index
    %238 = vector.load %arg7[%c0_44, %c0_45] : memref<2x1xf32, #tpu.memory_space<vmem>>, vector<2x1xf32>
    tpu.vector_store %arg7[%c0_44, %c0_45], %237 {strides = array<i32>} : memref<2x1xf32, #tpu.memory_space<vmem>>, vector<2x1xf32>,
    return
  }
  func.func @transform_0(%arg0: i32) -> (i32, i32) {
    %c0_i32 = arith.constant 0 : i32
    %c0_i32_0 = arith.constant 0 : i32
    %c0_i32_1 = arith.constant 0 : i32
    return %c0_i32, %c0_i32_0 : i32, i32
  }
  func.func @transform_1(%arg0: i32) -> (i32, i32) {
    %c0_i32 = arith.constant 0 : i32
    %c0_i32_0 = arith.constant 0 : i32
    %c0_i32_1 = arith.constant 0 : i32
    return %c0_i32, %c0_i32_0 : i32, i32
  }
  func.func @transform_2(%arg0: i32) -> (i32, i32) {
    %c0_i32 = arith.constant 0 : i32
    %c0_i32_0 = arith.constant 0 : i32
    %c0_i32_1 = arith.constant 0 : i32
    return %c0_i32, %c0_i32_0 : i32, i32
  }
  func.func @transform_3(%arg0: i32) -> (i32, i32) {
    %c0_i32 = arith.constant 0 : i32
    %c0_i32_0 = arith.constant 0 : i32
    %c0_i32_1 = arith.constant 0 : i32
    return %c0_i32, %c0_i32_0 : i32, i32
  }
  func.func @transform_4(%arg0: i32) -> (i32, i32) {
    %c0_i32 = arith.constant 0 : i32
    %c0_i32_0 = arith.constant 0 : i32
    %c0_i32_1 = arith.constant 0 : i32
    return %c0_i32, %c0_i32_0 : i32, i32
  }
  func.func @transform_5(%arg0: i32) -> (i32, i32) {
    %c0_i32 = arith.constant 0 : i32
    %c0_i32_0 = arith.constant 0 : i32
    %c0_i32_1 = arith.constant 0 : i32
    return %c0_i32, %c0_i32_0 : i32, i32
  }
  func.func @transform_6(%arg0: i32) -> (i32, i32) {
    %c0_i32 = arith.constant 0 : i32
    %c0_i32_0 = arith.constant 0 : i32
    %c0_i32_1 = arith.constant 0 : i32
    return %c0_i32, %c0_i32_0 : i32, i32
  }
}

</mosaic_0001>

<bundles_post_ra>
// kernel: tpu_custom_call.1
= control target key start
LH: loop header
LB: loop body
LE: loop exit
PB: predicated region body
PF: predicated region fallthrough
CT: control target
= control target key end

     0   :  { %s2633_s0 = inlined_call_operand.vmem [shape: f32[16,4], index: 0, kind: input, shape index: {}]   ;;  %s2634_s1 = inlined_call_operand.vmem [shape: f32[4,512], index: 1, kind: input, shape index: {}]   ;;  %s2635_s2 = inlined_call_operand.hbm [shape: f32[128,512], index: 2, kind: input, shape index: {}]   ;;  %s2636_s3 = inlined_call_operand.vmem [shape: f32[1,512], index: 3, kind: input, shape index: {}]   ;;  %s2637_s4 = inlined_call_operand.vmem [shape: f32[1,128], index: 4, kind: input, shape index: {}]   ;;  %s2638_s5 = inlined_call_operand.<no memory space> [shape: f32[1,1], index: 5, kind: input, shape index: {}]   ;;  %s2639_s6 = inlined_call_operand.vmem [shape: f32[2,1], index: 6, kind: output, shape index: {}]  }
   0x1   :  { %v11_v0 = vstv %s2638_s5 }
   0x2   :  { %12 = vst [vmem:[#allocation2] sm:$0x1] %v11_v0 }
   0x3   :  { %13 = vsyncpa [#allocation4], 0  ;;  %s22_s25 = sshll.u32 %s2635_s2, 4  ;;  %s1716_s26 = smov [#allocation3]   ;;  %s23_s25 = int_to_ptr.hbm [resolvable:$true] %s22_s25 }
   0x4   :  { %s24_s27 = sshll.u32 %s1716_s26, 4  ;;  %s1717_s28 = smov 512   ;;  %s25_s27 = int_to_ptr.vmem [resolvable:$true] %s24_s27 }
   0x5   :  { %s1718_s29 = smov 32  }
   0x6   :  { %30 = dma.hbm_to_vmem [thread:$0]  %s23_s25, 8192, %s25_s27, [#allocation4], %s1717_s28, %s1717_s28, %s1718_s29  }
   0x7   :  { %1714 = dma.done.wait [#allocation4], 8192  }
   0x8   :  { %1715 = vsyncadd [#allocation4], 4294959104  ;;  %v43_v1 = vld [vmem:[%s2634_s1] sm:$0xff]  ;;  %v44_v2 = vld [vmem:[%s2634_s1 + $0x8] sm:$0xff]  ;;  %vm71_vm0 = vcmask 1043456   ;;  %vm64_vm1 = vcmask 31744  }
   0x9   :  { %57 = vst [vmem:[#allocation1] ss:$2 sm:$0xff] %v43_v1  ;;  %v41_v3 = vld [vmem:[%s2633_s0] sm:$0xff]  ;;  %v1773_v8 = vld [vmem:[#allocation3 + $0x1e0] sm:$0xff]  ;;  %v1775_v9 = vld [vmem:[#allocation3 + $0x1e8] sm:$0xff] }
   0xa   :  { %59 = vst [vmem:[#allocation1 + $0x10] ss:$2 sm:$0xff] %v44_v2  ;;  %v1777_v10 = vld [vmem:[#allocation3 + $0x1f0] sm:$0xff]  ;;  %v1781_v11 = vld [vmem:[#allocation3 + $0x1f8] sm:$0xff]  ;;  %v1785_v12 = vld [vmem:[#allocation3 + $0x1c0] sm:$0xff] }
   0xb   :  { %2774 = vst [vmem:[#allocation6_spill] sm:$0xff] %v1775_v9  ;;  %v1787_v13 = vld [vmem:[#allocation3 + $0x1c8] sm:$0xff]  ;;  %v1789_v14 = vld [vmem:[#allocation3 + $0x1d0] sm:$0xff]  ;;  %v1793_v15 = vld [vmem:[#allocation3 + $0x1d8] sm:$0xff] }
   0xc   :  { %2775 = vst [vmem:[#allocation7_spill] sm:$0xff] %v1781_v11  ;;  %v1797_v16 = vld [vmem:[#allocation3 + $0x1a0] sm:$0xff]  ;;  %v1799_v17 = vld [vmem:[#allocation3 + $0x1a8] sm:$0xff]  ;;  %v1801_v18 = vld [vmem:[#allocation3 + $0x1b0] sm:$0xff] }
   0xd   :  { %2776 = vst [vmem:[#allocation8_spill] sm:$0xff] %v1799_v17  ;;  %v1805_v19 = vld [vmem:[#allocation3 + $0x1b8] sm:$0xff]  ;;  %v1809_v20 = vld [vmem:[#allocation3 + $0x180] sm:$0xff]  ;;  %v1811_v21 = vld [vmem:[#allocation3 + $0x188] sm:$0xff] }
   0xe   :  { %2777 = vst [vmem:[#allocation9_spill] sm:$0xff] %v1801_v18  ;;  %v1813_v22 = vld [vmem:[#allocation3 + $0x190] sm:$0xff]  ;;  %v1817_v23 = vld [vmem:[#allocation3 + $0x198] sm:$0xff]  ;;  %v1821_v24 = vld [vmem:[#allocation3 + $0x160] sm:$0xff] }
   0xf   :  { %2778 = vst [vmem:[#allocation10_spill] sm:$0xff] %v1805_v19  ;;  %v1823_v25 = vld [vmem:[#allocation3 + $0x168] sm:$0xff]  ;;  %v1825_v26 = vld [vmem:[#allocation3 + $0x170] sm:$0xff]  ;;  %v1829_v27 = vld [vmem:[#allocation3 + $0x178] sm:$0xff] }
  0x10   :  { %v60_v4 = vld.sshfl [vmem:[#allocation1] sm:$0xff pattern:$0x75316420]  ;;  %v61_v5 = vld.sshfl [vmem:[#allocation1 + $0x8] sm:$0xff pattern:$0x75316420] }
  0x11   :  { %1457 = vmatpush.msk.msra.mxu0 %vm71_vm0, %v60_v4  ;;  %1460 = vmatpush.msk.msra.mxu1 %vm71_vm0, %v61_v5  ;;  %v63_v6 = vld.sshfl [vmem:[#allocation1 + $0x18] sm:$0xff pattern:$0x75316420]  ;;  %v62_v7 = vld.sshfl [vmem:[#allocation1 + $0x10] sm:$0xff pattern:$0x75316420] }
  0x12   :  { %1466 = vmatpush.msk.msra.mxu3 %vm71_vm0, %v63_v6  ;;  %1458 = vmatmul.msk.f32.vlgmr.msra.gmra.mxu0 %vm64_vm1, %v41_v3  ;;  %2779 = vst [vmem:[#allocation11_spill] sm:$0xff] %v1811_v21  ;;  %v1833_v28 = vld [vmem:[#allocation3 + $0x140] sm:$0xff]  ;;  %v1835_v29 = vld [vmem:[#allocation3 + $0x148] sm:$0xff]  ;;  %v1837_v30 = vld [vmem:[#allocation3 + $0x150] sm:$0xff] }
  0x13   :  { %1461 = vmatmul.msk.f32.vlgmr.msra.gmra.mxu1 %vm64_vm1, %v41_v3  ;;  %1467 = vmatmul.msk.f32.vlgmr.msra.gmra.mxu3 %vm64_vm1, %v41_v3  ;;  %2780 = vst [vmem:[#allocation12_spill] sm:$0xff] %v1821_v24  ;;  %v1841_v31 = vld [vmem:[#allocation3 + $0x158] sm:$0xff]  ;;  %v1845_v32 = vld [vmem:[#allocation3 + $0x120] sm:$0xff]  ;;  %v1847_v33 = vld [vmem:[#allocation3 + $0x128] sm:$0xff] }
  0x14   :  { %1463 = vmatpush.msk.msra.mxu2 %vm71_vm0, %v62_v7  ;;  %299 = vmatpush.msrb.mxu0 %v1773_v8  ;;  %2781 = vst [vmem:[#allocation13_spill] sm:$0xff] %v1823_v25  ;;  %v1849_v34 = vld [vmem:[#allocation3 + $0x130] sm:$0xff]  ;;  %v1858_v36 = vld [vmem:[#allocation3 + $0x138] sm:$0xff]  ;;  %v1862_v37 = vld [vmem:[#allocation3 + $0x100] sm:$0xff] }
  0x15   :  { %1464 = vmatmul.msk.f32.vlgmr.msra.gmra.mxu2 %vm64_vm1, %v41_v3  ;;  %319 = vmatpush.msrb.mxu1 %v1775_v9  ;;  %2782 = vst [vmem:[#allocation14_spill] sm:$0xff] %v1829_v27  ;;  %v1854_v35 = vld [vmem:[%s2636_s3] sm:$0xf]  ;;  %v1864_v38 = vld [vmem:[#allocation3 + $0x108] sm:$0xff]  ;;  %v1875_v42 = vld [vmem:[#allocation3 + $0xe0] sm:$0xff] }
  0x16   :  { %339 = vmatpush.msrb.mxu2 %v1777_v10  ;;  %359 = vmatpush.msrb.mxu3 %v1781_v11  ;;  %2783 = vst [vmem:[#allocation15_spill] sm:$0xff] %v1833_v28  ;;  %v1866_v39 = vld [vmem:[#allocation3 + $0x110] sm:$0xff]  ;;  %v1870_v40 = vld [vmem:[#allocation3 + $0x118] sm:$0xff]  ;;  %v2641_v41 = vperm.slane %v1854_v35, 0  ;;  %v1877_v43 = vld [vmem:[#allocation3 + $0xe8] sm:$0xff]  ;;  %v2640_v45 = vperm.slane %v1854_v35, 1 }
  0x17   :  { %300 = vmatpush.msrb.mxu0 %v1785_v12  ;;  %320 = vmatpush.msrb.mxu1 %v1787_v13  ;;  %2784 = vst [vmem:[#allocation16_spill] sm:$0xff] %v1841_v31  ;;  %v1879_v44 = vld [vmem:[#allocation3 + $0xf0] sm:$0xff]  ;;  %v1884_v46 = vld [vmem:[#allocation3 + $0xf8] sm:$0xff]  ;;  %v1888_v47 = vld [vmem:[#allocation3 + $0xc0] sm:$0xff]  ;;  %v2644_v2 = vperm.slane %v1854_v35, 3 }
  0x18   :  { %340 = vmatpush.msrb.mxu2 %v1789_v14  ;;  %360 = vmatpush.msrb.mxu3 %v1793_v15  ;;  %2785 = vst [vmem:[#allocation17_spill] sm:$0xff] %v1845_v32  ;;  %v1890_v48 = vld [vmem:[#allocation3 + $0xc8] sm:$0xff]  ;;  %v1892_v49 = vld [vmem:[#allocation3 + $0xd0] sm:$0xff]  ;;  %v1896_v51 = vld [vmem:[#allocation3 + $0xd8] sm:$0xff] }
  0x19   :  { %301 = vmatpush.msrb.mxu0 %v1797_v16  ;;  %321 = vmatpush.msrb.mxu1 %v1799_v17  ;;  %2786 = vst [vmem:[#allocation18_spill] sm:$0xff] %v1854_v35  ;;  %v1898_v52 = vld [vmem:[#allocation3 + $0xa0] sm:$0xff]  ;;  %v1900_v53 = vld [vmem:[#allocation3 + $0xa8] sm:$0xff]  ;;  %v1908_v56 = vld [vmem:[#allocation3 + $0xb0] sm:$0xff] }
  0x1a   :  { %341 = vmatpush.msrb.mxu2 %v1801_v18  ;;  %361 = vmatpush.msrb.mxu3 %v1805_v19  ;;  %2787 = vst [vmem:[#allocation19_spill] sm:$0xff] %v1896_v51  ;;  %v1910_v57 = vld [vmem:[#allocation3 + $0xb8] sm:$0xff]  ;;  %v1912_v58 = vld [vmem:[#allocation3 + $0x80] sm:$0xff]  ;;  %v1920_v60 = vld [vmem:[#allocation3 + $0x88] sm:$0xff] }
  0x1b   :  { %302 = vmatpush.msrb.mxu0 %v1809_v20  ;;  %322 = vmatpush.msrb.mxu1 %v1811_v21  ;;  %2788 = vst [vmem:[#allocation20_spill] sm:$0xff] %v1898_v52  ;;  %v1922_v61 = vld [vmem:[#allocation3 + $0x90] sm:$0xff]  ;;  %v1924_v62 = vld [vmem:[#allocation3 + $0x98] sm:$0xff]  ;;  %v1938_v3 = vld [vmem:[#allocation3 + $0x60] sm:$0xff] }
  0x1c   :  { %342 = vmatpush.msrb.mxu2 %v1813_v22  ;;  %362 = vmatpush.msrb.mxu3 %v1817_v23  ;;  %2789 = vst [vmem:[#allocation21_spill] sm:$0xff] %v1900_v53  ;;  %v42_v0 = vld [vmem:[%s2633_s0 + $0x8] sm:$0xff]  ;;  %v1940_v4 = vld [vmem:[#allocation3 + $0x68] sm:$0xff]  ;;  %v1944_v5 = vld [vmem:[#allocation3 + $0x70] sm:$0xff] }
  0x1d   :  { %303 = vmatpush.msrb.mxu0 %v1821_v24  ;;  %323 = vmatpush.msrb.mxu1 %v1823_v25  ;;  %2791 = vst [vmem:[#allocation23_spill] sm:$0xff] %v1908_v56  ;;  %v1946_v6 = vld [vmem:[#allocation3 + $0x78] sm:$0xff] }
  0x1e   :  { %343 = vmatpush.msrb.mxu2 %v1825_v26  ;;  %363 = vmatpush.msrb.mxu3 %v1829_v27  ;;  %2792 = vst [vmem:[#allocation24_spill] sm:$0xff] %v1910_v57 }
  0x1f   :  { %304 = vmatpush.msrb.mxu0 %v1833_v28  ;;  %324 = vmatpush.msrb.mxu1 %v1835_v29  ;;  %2793 = vst [vmem:[#allocation25_spill] sm:$0xff] %v1912_v58 }
  0x20   :  { %344 = vmatpush.msrb.mxu2 %v1837_v30  ;;  %364 = vmatpush.msrb.mxu3 %v1841_v31  ;;  %2795 = vst [vmem:[#allocation27_spill] sm:$0xff] %v1920_v60 }
  0x21   :  { %305 = vmatpush.msrb.mxu0 %v1845_v32  ;;  %325 = vmatpush.msrb.mxu1 %v1847_v33  ;;  %2796 = vst [vmem:[#allocation28_spill] sm:$0xff] %v1922_v61 }
  0x22   :  { %345 = vmatpush.msrb.mxu2 %v1849_v34  ;;  %365 = vmatpush.msrb.mxu3 %v1858_v36  ;;  %2797 = vst [vmem:[#allocation29_spill] sm:$0xff] %v1924_v62 }
  0x23   :  { %306 = vmatpush.msrb.mxu0 %v1862_v37  ;;  %326 = vmatpush.msrb.mxu1 %v1864_v38  ;;  %2798 = vst [vmem:[#allocation30_spill] sm:$0xff] %v1938_v3 }
  0x24   :  { %346 = vmatpush.msrb.mxu2 %v1866_v39  ;;  %366 = vmatpush.msrb.mxu3 %v1870_v40  ;;  %2799 = vst [vmem:[#allocation31_spill] sm:$0xff] %v1940_v4 }
  0x25   :  { %307 = vmatpush.msrb.mxu0 %v1875_v42  ;;  %327 = vmatpush.msrb.mxu1 %v1877_v43  ;;  %2800 = vst [vmem:[#allocation32_spill] sm:$0xff] %v1944_v5 }
  0x26   :  { %347 = vmatpush.msrb.mxu2 %v1879_v44  ;;  %367 = vmatpush.msrb.mxu3 %v1884_v46  ;;  %2801 = vst [vmem:[#allocation33_spill] sm:$0xff] %v1946_v6 }
  0x27   :  { %308 = vmatpush.msrb.mxu0 %v1888_v47  ;;  %328 = vmatpush.msrb.mxu1 %v1890_v48 }
  0x28   :  { %348 = vmatpush.msrb.mxu2 %v1892_v49  ;;  %368 = vmatpush.msrb.mxu3 %v1896_v51 }
  0x29   :  { %309 = vmatpush.msrb.mxu0 %v1898_v52  ;;  %329 = vmatpush.msrb.mxu1 %v1900_v53 }
  0x2a   :  { %349 = vmatpush.msrb.mxu2 %v1908_v56  ;;  %369 = vmatpush.msrb.mxu3 %v1910_v57 }
  0x2b   :  { %310 = vmatpush.msrb.mxu0 %v1912_v58  ;;  %330 = vmatpush.msrb.mxu1 %v1920_v60 }
  0x2c   :  { %350 = vmatpush.msrb.mxu2 %v1922_v61  ;;  %370 = vmatpush.msrb.mxu3 %v1924_v62 }
  0x2d   :  { %1459 = vmatmul.msk.f32.gmra.mxu0 %vm64_vm1, %v42_v0  ;;  %1462 = vmatmul.msk.f32.gmra.mxu1 %vm64_vm1, %v42_v0 }
  0x2e   :  { %1465 = vmatmul.msk.f32.gmra.mxu2 %vm64_vm1, %v42_v0  ;;  %1468 = vmatmul.msk.f32.gmra.mxu3 %vm64_vm1, %v42_v0  ;;  %v1966_v0 = vld [vmem:[#allocation3 + $0x20] sm:$0xff] }
  0x2f   :  { %311 = vmatpush.msrb.mxu0 %v1938_v3  ;;  %331 = vmatpush.msrb.mxu1 %v1940_v4  ;;  %2807 = vst [vmem:[#allocation39_spill] sm:$0xff] %v1966_v0 }
  0x30   :  { %351 = vmatpush.msrb.mxu2 %v1944_v5  ;;  %371 = vmatpush.msrb.mxu3 %v1946_v6  ;;  %v1979_v6 = vld [vmem:[#allocation3] sm:$0xff]  ;;  %v1981_v5 = vld [vmem:[#allocation3 + $0x8] sm:$0xff] }
  0x31   :  { %2811 = vst [vmem:[#allocation43_spill] sm:$0xff] %v1979_v6 }
  0x32   :  { %2812 = vst [vmem:[#allocation44_spill] sm:$0xff] %v1981_v5 }
  0x8f   :  { %v97_v50 = vpop.f32.mrf.mxu0 }
  0x90   :  { %v1904_v54 = vadd.f32 %v97_v50, %v2641_v41  ;;  %v120_v55 = vpop.f32.mrf.mxu1  ;;  %v1950_v50 = vld [vmem:[#allocation3 + $0x40] sm:$0xff]  ;;  %v1968_v41 = vld [vmem:[#allocation3 + $0x28] sm:$0xff] }
  0x91   :  { %v1916_v59 = vadd.f32 %v120_v55, %v2640_v45  ;;  %2802 = vst [vmem:[#allocation34_spill] sm:$0xff] %v1950_v50  ;;  %v1952_v55 = vld [vmem:[#allocation3 + $0x48] sm:$0xff]  ;;  %v1962_v45 = vld [vmem:[#allocation3 + $0x58] sm:$0xff]  ;;  %312 = vmatpush.msrb.mxu0 %v1950_v50 }
  0x92   :  { %2790 = vst [vmem:[#allocation22_spill] sm:$0xff] %v1904_v54  ;;  %v1469_v63 = vmul.f32 -1.442695, %v1904_v54  ;;  %332 = vmatpush.msrb.mxu1 %v1952_v55  ;;  %372 = vmatpush.msrb.mxu3 %v1962_v45 }
  0x93   :  { %2794 = vst [vmem:[#allocation26_spill] sm:$0xff] %v1916_v59  ;;  %v1470_v1 = vmul.f32 -1.442695, %v1916_v59  ;;  %313 = vmatpush.msrb.mxu0 %v1966_v0 }
  0x94   :  { %1498 = vpow2.f32 %v1469_v63  ;;  %2803 = vst [vmem:[#allocation35_spill] sm:$0xff] %v1952_v55  ;;  %333 = vmatpush.msrb.mxu1 %v1968_v41  ;;  %v1989_v55 = vld [vmem:[#allocation3 + $0x18] sm:$0xff] }
  0x95   :  { %1500 = vpow2.f32 %v1470_v1  ;;  %v1960_v1 = vld [vmem:[#allocation3 + $0x50] sm:$0xff]  ;;  %2806 = vst [vmem:[#allocation38_spill] sm:$0xff] %v1962_v45  ;;  %314 = vmatpush.msrb.mxu0 %v1979_v6 }
  0x96   :  { %v166_v7 = vpop.f32.mrf.mxu3  ;;  %2805 = vst [vmem:[#allocation37_spill] sm:$0xff] %v1960_v1  ;;  %352 = vmatpush.msrb.mxu2 %v1960_v1  ;;  %334 = vmatpush.msrb.mxu1 %v1981_v5 }
  0x97   :  { %v1956_v63 = vadd.f32 %v166_v7, %v2644_v2  ;;  %2808 = vst [vmem:[#allocation40_spill] sm:$0xff] %v1968_v41  ;;  %v1973_v7 = vld [vmem:[#allocation3 + $0x30] sm:$0xff]  ;;  %v1975_v2 = vld [vmem:[#allocation3 + $0x38] sm:$0xff]  ;;  %464 = vmatpush.msra.mxu0 %v1773_v8 }
  0x98   :  { %2809 = vst [vmem:[#allocation41_spill] sm:$0xff] %v1973_v7  ;;  %353 = vmatpush.msrb.mxu2 %v1973_v7  ;;  %373 = vmatpush.msrb.mxu3 %v1975_v2 }
  0x99   :  { %2804 = vst [vmem:[#allocation36_spill] sm:$0xff] %v1956_v63  ;;  %v1471_v59 = vmul.f32 -1.442695, %v1956_v63  ;;  %v1987_v63 = vld [vmem:[#allocation3 + $0x10] sm:$0xff]  ;;  %484 = vmatpush.msra.mxu1 %v1775_v9  ;;  %465 = vmatpush.msra.mxu0 %v1785_v12 }
  0x9a   :  { %2810 = vst [vmem:[#allocation42_spill] sm:$0xff] %v1975_v2  ;;  %v1499_v54 = vpop.eup %1498  ;;  %354 = vmatpush.msrb.mxu2 %v1987_v63  ;;  %374 = vmatpush.msrb.mxu3 %v1989_v55 }
  0x9b   :  { %v1501_v4 = vpop.eup %1500  ;;  %v1983_v3 = vadd.f32 1.0, %v1499_v54  ;;  %1502 = vpow2.f32 %v1471_v59  ;;  %2813 = vst [vmem:[#allocation45_spill] sm:$0xff] %v1987_v63  ;;  %v2671_v54 = vperm.slane %v1854_v35, 2  ;;  %v143_v59 = vpop.f32.mrf.mxu2  ;;  %485 = vmatpush.msra.mxu1 %v1787_v13  ;;  %466 = vmatpush.msra.mxu0 %v1797_v16 }
  0x9c   :  { %2814 = vst [vmem:[#allocation46_spill] sm:$0xff] %v1989_v55  ;;  %v1991_v50 = vadd.f32 1.0, %v1501_v4  ;;  %504 = vmatpush.msra.mxu2 %v1777_v10  ;;  %524 = vmatpush.msra.mxu3 %v1781_v11 }
  0x9d   :  { %1504 = vrcp.f32 %v1983_v3  ;;  %v2008_v6 = vadd.f32 %v143_v59, %v2671_v54  ;;  %486 = vmatpush.msra.mxu1 %v1799_v17  ;;  %467 = vmatpush.msra.mxu0 %v1809_v20  ;;  %v251_v17 = vand.u32 2147483648, %v1983_v3  ;;  %vm245_vm4 = vweird.f32 %v1983_v3 }
  0x9e   :  { %1506 = vrcp.f32 %v1991_v50  ;;  %505 = vmatpush.msra.mxu2 %v1789_v14  ;;  %525 = vmatpush.msra.mxu3 %v1793_v15  ;;  %vm264_vm5 = vweird.f32 %v1991_v50 }
  0x9f   :  { %2815 = vst [vmem:[#allocation47_spill] sm:$0xff] %v2008_v6  ;;  %487 = vmatpush.msra.mxu1 %v1811_v21  ;;  %468 = vmatpush.msra.mxu0 %v1821_v24 }
  0xa0   :  { %506 = vmatpush.msra.mxu2 %v1801_v18  ;;  %526 = vmatpush.msra.mxu3 %v1805_v19  ;;  %v270_v19 = vand.u32 2147483648, %v1991_v50 }
  0xa1   :  { %v1503_v4 = vpop.eup %1502  ;;  %488 = vmatpush.msra.mxu1 %v1823_v25  ;;  %469 = vmatpush.msra.mxu0 %v1833_v28 }
  0xa2   :  { %v2012_v63 = vadd.f32 1.0, %v1503_v4  ;;  %507 = vmatpush.msra.mxu2 %v1813_v22  ;;  %527 = vmatpush.msra.mxu3 %v1817_v23 }
  0xa3   :  { %v1505_v9 = vpop.eup %1504  ;;  %489 = vmatpush.msra.mxu1 %v1835_v29  ;;  %470 = vmatpush.msra.mxu0 %v1845_v32 }
  0xa4   :  { %v1507_v11 = vpop.eup %1506  ;;  %v241_v35 = vmul.f32 %v1505_v9, %v1983_v3  ;;  %1508 = vrcp.f32 %v2012_v63  ;;  %vm246_vm2 = vweird.f32 %v1505_v9  ;;  %508 = vmatpush.msra.mxu2 %v1825_v26  ;;  %528 = vmatpush.msra.mxu3 %v1829_v27  ;;  %vm284_vm11 = vweird.f32 %v2012_v63 }
  0xa5   :  { %v260_v59 = vmul.f32 %v1507_v11, %v1991_v50  ;;  %1510 = vtanh.f32 %v2008_v6  ;;  %v249_v6 = vand.u32 2147483647, %v1983_v3  ;;  %vm265_vm3 = vweird.f32 %v1507_v11  ;;  %vm247_vm6 = vmor %vm245_vm4, %vm246_vm2  ;;  %490 = vmatpush.msra.mxu1 %v1847_v33  ;;  %471 = vmatpush.msra.mxu0 %v1862_v37 }
  0xa6   :  { %v242_v4 = vsub.f32 1.0, %v241_v35  ;;  %509 = vmatpush.msra.mxu2 %v1837_v30  ;;  %529 = vmatpush.msra.mxu3 %v1841_v31  ;;  %vm266_vm8 = vmor %vm264_vm5, %vm265_vm3  ;;  %v271_v3 = vor.u32 1.1754944e-38, %v270_v19 }
  0xa7   :  { %v261_v54 = vsub.f32 1.0, %v260_v59  ;;  %v268_v59 = vand.u32 2147483647, %v1991_v50  ;;  %vm250_vm7 = vcmp.eq.f32.partialorder %v249_v6, 8.507059e+37  ;;  %491 = vmatpush.msra.mxu1 %v1864_v38  ;;  %472 = vmatpush.msra.mxu0 %v1875_v42  ;;  %v2816_v6 = vld [vmem:[#allocation30_spill] sm:$0xff] }
  0xa8   :  { %v243_v18 = vmul.f32 %v1505_v9, %v242_v4  ;;  %510 = vmatpush.msra.mxu2 %v1849_v34  ;;  %530 = vmatpush.msra.mxu3 %v1858_v36 }
  0xa9   :  { %v262_v35 = vmul.f32 %v1507_v11, %v261_v54  ;;  %v252_v54 = vor.u32 1.1754944e-38, %v251_v17  ;;  %vm269_vm9 = vcmp.eq.f32.partialorder %v268_v59, 8.507059e+37  ;;  %492 = vmatpush.msra.mxu1 %v1877_v43  ;;  %473 = vmatpush.msra.mxu0 %v1888_v47  ;;  %v2817_v59 = vld [vmem:[#allocation31_spill] sm:$0xff] }
  0xaa   :  { %v2038_v24 = vpop.eup %1508  ;;  %v244_v25 = vadd.f32 %v1505_v9, %v243_v18  ;;  %511 = vmatpush.msra.mxu2 %v1866_v39  ;;  %531 = vmatpush.msra.mxu3 %v1870_v40 }
  0xab   :  { %v1511_v4 = vpop.eup %1510  ;;  %v263_v27 = vadd.f32 %v1507_v11, %v262_v35  ;;  %v280_v28 = vmul.f32 %v2038_v24, %v2012_v63  ;;  %493 = vmatpush.msra.mxu1 %v1890_v48  ;;  %vm285_vm10 = vweird.f32 %v2038_v24  ;;  %474 = vmatpush.msra.mxu0 %v1898_v52 }
  0xac   :  { %v248_v18 = vsel %vm247_vm6, %v1505_v9, %v244_v25  ;;  %512 = vmatpush.msra.mxu2 %v1879_v44  ;;  %532 = vmatpush.msra.mxu3 %v1884_v46  ;;  %vm286_vm12 = vmor %vm284_vm11, %vm285_vm10 }
  0xad   :  { %v253_v50 = vsel %vm250_vm7, %v252_v54, %v248_v18  ;;  %v267_v31 = vsel %vm266_vm8, %v1507_v11, %v263_v27  ;;  %v281_v17 = vsub.f32 1.0, %v280_v28  ;;  %v290_v27 = vand.u32 2147483648, %v2012_v63  ;;  %494 = vmatpush.msra.mxu1 %v1900_v53  ;;  %475 = vmatpush.msra.mxu0 %v1912_v58 }
  0xae   :  { %v295_v35 = vmul.f32 %v1511_v4, %v253_v50  ;;  %v272_v32 = vsel %vm269_vm9, %v271_v3, %v267_v31  ;;  %513 = vmatpush.msra.mxu2 %v1892_v49  ;;  %533 = vmatpush.msra.mxu3 %v1896_v51  ;;  %v288_v28 = vand.u32 2147483647, %v2012_v63  ;;  %v2818_v63 = vld [vmem:[#allocation32_spill] sm:$0xff]  ;;  %v2819_v4 = vld [vmem:[#allocation33_spill] sm:$0xff]  ;;  %v2820_v3 = vld [vmem:[#allocation34_spill] sm:$0xff] }
  0xaf   :  { %v282_v9 = vmul.f32 %v2038_v24, %v281_v17  ;;  %v294_v19 = vmul.f32 0.0, %v272_v32  ;;  %495 = vmatpush.msra.mxu1 %v1920_v60  ;;  %v291_v32 = vor.u32 1.1754944e-38, %v290_v27  ;;  %476 = vmatpush.msra.mxu0 %v2816_v6  ;;  %v2821_v50 = vld [vmem:[#allocation35_spill] sm:$0xff]  ;;  %v2827_v27 = vld [vmem:[#allocation9_spill] sm:$0xff] }
  0xb0   :  { %514 = vmatpush.msra.mxu2 %v1908_v56  ;;  %534 = vmatpush.msra.mxu3 %v1910_v57  ;;  %vm289_vm13 = vcmp.eq.f32.partialorder %v288_v28, 8.507059e+37  ;;  %v2822_v17 = vld [vmem:[#allocation43_spill] sm:$0xff]  ;;  %v2828_v28 = vld [vmem:[#allocation10_spill] sm:$0xff] }
  0xb1   :  { %v2061_v11 = vadd.f32 %v295_v35, %v294_v19  ;;  %v283_v25 = vadd.f32 %v2038_v24, %v282_v9  ;;  %496 = vmatpush.msra.mxu1 %v2817_v59  ;;  %477 = vmatpush.msra.mxu0 %v2820_v3  ;;  %v2823_v35 = vld [vmem:[#allocation45_spill] sm:$0xff]  ;;  %v2824_v9 = vld [vmem:[#allocation6_spill] sm:$0xff]  ;;  %v2825_v19 = vld [vmem:[#allocation7_spill] sm:$0xff] }
  0xb2   :  { %515 = vmatpush.msra.mxu2 %v1922_v61  ;;  %535 = vmatpush.msra.mxu3 %v1924_v62 }
  0xb3   :  { %1512 = vtanh.f32 %v2061_v11  ;;  %v287_v31 = vsel %vm286_vm12, %v2038_v24, %v283_v25  ;;  %497 = vmatpush.msra.mxu1 %v2821_v50  ;;  %478 = vmatpush.msra.mxu0 %v1966_v0  ;;  %v2826_v25 = vld [vmem:[#allocation8_spill] sm:$0xff] }
  0xb4   :  { %516 = vmatpush.msra.mxu2 %v2818_v63  ;;  %536 = vmatpush.msra.mxu3 %v2819_v4  ;;  %v292_v18 = vsel %vm289_vm13, %v291_v32, %v287_v31  ;;  %v2829_v31 = vld [vmem:[#allocation12_spill] sm:$0xff]  ;;  %v2830_v32 = vld [vmem:[#allocation13_spill] sm:$0xff] }
  0xb5   :  { %498 = vmatpush.msra.mxu1 %v1968_v41  ;;  %479 = vmatpush.msra.mxu0 %v2822_v17 }
  0xb6   :  { %517 = vmatpush.msra.mxu2 %v1960_v1  ;;  %537 = vmatpush.msra.mxu3 %v1962_v45 }
  0xb7   :  { %499 = vmatpush.msra.mxu1 %v1981_v5 }
  0xb8   :  { %518 = vmatpush.msra.mxu2 %v1973_v7  ;;  %538 = vmatpush.msra.mxu3 %v1975_v2 }
  0xb9   :  { %v1513_v54 = vpop.eup %1512 }
  0xba   :  { %v298_v24 = vmul.f32 %v1513_v54, %v292_v18  ;;  %519 = vmatpush.msra.mxu2 %v2823_v35  ;;  %539 = vmatpush.msra.mxu3 %v1989_v55  ;;  %v2831_v54 = vld [vmem:[#allocation14_spill] sm:$0xff]  ;;  %v2832_v18 = vld [vmem:[#allocation15_spill] sm:$0xff] }
  0xbc   :  { %315 = vmatmul.f32.vlgmr.msrb.gmra.mxu0 %v298_v24  ;;  %335 = vmatmul.f32.vlgmr.msrb.gmra.mxu1 %v298_v24 }
  0xbd   :  { %355 = vmatmul.f32.vlgmr.msrb.gmra.mxu2 %v298_v24  ;;  %375 = vmatmul.f32.vlgmr.msrb.gmra.mxu3 %v298_v24  ;;  %v2833_v24 = vld [vmem:[#allocation16_spill] sm:$0xff] }
  0xbe   :  { %629 = vmatpush.msrb.mxu0 %v1773_v8  ;;  %649 = vmatpush.msrb.mxu1 %v2824_v9 }
  0xbf   :  { %669 = vmatpush.msrb.mxu2 %v1777_v10  ;;  %689 = vmatpush.msrb.mxu3 %v2825_v19 }
  0xc0   :  { %630 = vmatpush.msrb.mxu0 %v1785_v12  ;;  %650 = vmatpush.msrb.mxu1 %v1787_v13 }
  0xc1   :  { %670 = vmatpush.msrb.mxu2 %v1789_v14  ;;  %690 = vmatpush.msrb.mxu3 %v1793_v15 }
  0xc2   :  { %631 = vmatpush.msrb.mxu0 %v1797_v16  ;;  %651 = vmatpush.msrb.mxu1 %v2826_v25 }
  0xc3   :  { %671 = vmatpush.msrb.mxu2 %v2827_v27  ;;  %691 = vmatpush.msrb.mxu3 %v2828_v28 }
  0xc4   :  { %632 = vmatpush.msrb.mxu0 %v1809_v20  ;;  %652 = vmatpush.msrb.mxu1 %v1811_v21  ;;  %v2834_v21 = vld [vmem:[#allocation17_spill] sm:$0xff] }
  0xc5   :  { %672 = vmatpush.msrb.mxu2 %v1813_v22  ;;  %692 = vmatpush.msrb.mxu3 %v1817_v23 }
  0xc6   :  { %633 = vmatpush.msrb.mxu0 %v2829_v31  ;;  %653 = vmatpush.msrb.mxu1 %v2830_v32 }
  0xc7   :  { %673 = vmatpush.msrb.mxu2 %v1825_v26  ;;  %693 = vmatpush.msrb.mxu3 %v2831_v54 }
  0xc8   :  { %634 = vmatpush.msrb.mxu0 %v2832_v18  ;;  %654 = vmatpush.msrb.mxu1 %v1835_v29 }
  0xc9   :  { %674 = vmatpush.msrb.mxu2 %v1837_v30  ;;  %694 = vmatpush.msrb.mxu3 %v2833_v24 }
  0xca   :  { %635 = vmatpush.msrb.mxu0 %v2834_v21  ;;  %655 = vmatpush.msrb.mxu1 %v1847_v33 }
  0xcb   :  { %675 = vmatpush.msrb.mxu2 %v1849_v34  ;;  %695 = vmatpush.msrb.mxu3 %v1858_v36 }
  0xcc   :  { %636 = vmatpush.msrb.mxu0 %v1862_v37  ;;  %656 = vmatpush.msrb.mxu1 %v1864_v38 }
  0xcd   :  { %676 = vmatpush.msrb.mxu2 %v1866_v39  ;;  %696 = vmatpush.msrb.mxu3 %v1870_v40 }
  0xce   :  { %637 = vmatpush.msrb.mxu0 %v1875_v42  ;;  %657 = vmatpush.msrb.mxu1 %v1877_v43 }
  0xcf   :  { %677 = vmatpush.msrb.mxu2 %v1879_v44  ;;  %697 = vmatpush.msrb.mxu3 %v1884_v46 }
  0xd0   :  { %638 = vmatpush.msrb.mxu0 %v1888_v47  ;;  %658 = vmatpush.msrb.mxu1 %v1890_v48 }
  0xd1   :  { %678 = vmatpush.msrb.mxu2 %v1892_v49  ;;  %698 = vmatpush.msrb.mxu3 %v1896_v51 }
  0xd2   :  { %639 = vmatpush.msrb.mxu0 %v1898_v52  ;;  %659 = vmatpush.msrb.mxu1 %v1900_v53 }
  0xd3   :  { %679 = vmatpush.msrb.mxu2 %v1908_v56  ;;  %699 = vmatpush.msrb.mxu3 %v1910_v57 }
  0xd4   :  { %640 = vmatpush.msrb.mxu0 %v1912_v58  ;;  %660 = vmatpush.msrb.mxu1 %v1920_v60 }
  0xd5   :  { %680 = vmatpush.msrb.mxu2 %v1922_v61  ;;  %700 = vmatpush.msrb.mxu3 %v1924_v62 }
  0xd6   :  { %641 = vmatpush.msrb.mxu0 %v2816_v6  ;;  %661 = vmatpush.msrb.mxu1 %v2817_v59  ;;  %v2170_v59 = vpop.f32.mrf.mxu2  ;;  %v2841_v6 = vld [vmem:[#allocation36_spill] sm:$0xff] }
  0xd7   :  { %681 = vmatpush.msrb.mxu2 %v2818_v63  ;;  %701 = vmatpush.msrb.mxu3 %v2819_v4  ;;  %v2838_v4 = vld [vmem:[#allocation22_spill] sm:$0xff]  ;;  %2840 = vst [vmem:[#allocation9_spill] sm:$0xff] %v2170_v59 }
  0xd8   :  { %642 = vmatpush.msrb.mxu0 %v2820_v3  ;;  %662 = vmatpush.msrb.mxu1 %v2821_v50  ;;  %v2162_v50 = vpop.f32.mrf.mxu0  ;;  %v2839_v63 = vld [vmem:[#allocation26_spill] sm:$0xff] }
  0xd9   :  { %682 = vmatpush.msrb.mxu2 %v1960_v1  ;;  %702 = vmatpush.msrb.mxu3 %v1962_v45  ;;  %2835 = vst [vmem:[#allocation6_spill] sm:$0xff] %v2162_v50  ;;  %v2164_v1 = vpop.f32.mrf.mxu1  ;;  %v2166_v45 = vpop.f32.mrf.mxu3 }
  0xda   :  { %643 = vmatpush.msrb.mxu0 %v1966_v0  ;;  %663 = vmatpush.msrb.mxu1 %v1968_v41  ;;  %2836 = vst [vmem:[#allocation7_spill] sm:$0xff] %v2164_v1 }
  0xdb   :  { %683 = vmatpush.msrb.mxu2 %v1973_v7  ;;  %703 = vmatpush.msrb.mxu3 %v1975_v2  ;;  %2837 = vst [vmem:[#allocation8_spill] sm:$0xff] %v2166_v45 }
  0xdc   :  { %644 = vmatpush.msrb.mxu0 %v2822_v17  ;;  %664 = vmatpush.msrb.mxu1 %v1981_v5 }
  0xdd   :  { %684 = vmatpush.msrb.mxu2 %v2823_v35  ;;  %704 = vmatpush.msrb.mxu3 %v1989_v55 }
 0x139   :  { %v316_v0 = vpop.f32.mrf.mxu0  ;;  %v336_v41 = vpop.f32.mrf.mxu1 }
 0x13a   :  { %v383_v3 = vrot.slane %v316_v0, 6  ;;  %v384_v7 = vrot.slane %v336_v41, 6 }
 0x13c   :  { %v391_v2 = vadd.f32 %v383_v3, %v2838_v4  ;;  %v392_v17 = vadd.f32 %v384_v7, %v2839_v63 }
 0x13e   :  { %v1472_v5 = vmul.f32 -1.442695, %v391_v2  ;;  %v1473_v35 = vmul.f32 -1.442695, %v392_v17  ;;  %v2842_v17 = vld [vmem:[#allocation47_spill] sm:$0xff] }
 0x140   :  { %1514 = vpow2.f32 %v1472_v5  ;;  %v376_v55 = vpop.f32.mrf.mxu3  ;;  %v356_v0 = vpop.f32.mrf.mxu2 }
 0x141   :  { %1516 = vpow2.f32 %v1473_v35  ;;  %v386_v50 = vrot.slane %v376_v55, 6  ;;  %v385_v7 = vrot.slane %v356_v0, 6 }
 0x143   :  { %v394_v1 = vadd.f32 %v386_v50, %v2841_v6  ;;  %v393_v5 = vadd.f32 %v385_v7, %v2842_v17 }
 0x145   :  { %v1474_v62 = vmul.f32 -1.442695, %v394_v1 }
 0x146   :  { %v1515_v45 = vpop.eup %1514 }
 0x147   :  { %v1517_v61 = vpop.eup %1516  ;;  %v398_v60 = vadd.f32 1.0, %v1515_v45  ;;  %1518 = vpow2.f32 %v1474_v62 }
 0x148   :  { %v417_v41 = vadd.f32 1.0, %v1517_v61 }
 0x149   :  { %1520 = vrcp.f32 %v398_v60  ;;  %v410_v6 = vand.u32 2147483648, %v398_v60  ;;  %v408_v61 = vand.u32 2147483647, %v398_v60  ;;  %vm404_vm0 = vweird.f32 %v398_v60 }
 0x14a   :  { %1522 = vrcp.f32 %v417_v41  ;;  %v429_v45 = vand.u32 2147483648, %v417_v41  ;;  %v427_v0 = vand.u32 2147483647, %v417_v41  ;;  %vm423_vm1 = vweird.f32 %v417_v41 }
 0x14b   :  { %v411_v7 = vor.u32 1.1754944e-38, %v410_v6  ;;  %vm409_vm4 = vcmp.eq.f32.partialorder %v408_v61, 8.507059e+37 }
 0x14c   :  { %vm428_vm5 = vcmp.eq.f32.partialorder %v427_v0, 8.507059e+37 }
 0x14d   :  { %v1519_v3 = vpop.eup %1518 }
 0x14e   :  { %v437_v59 = vadd.f32 1.0, %v1519_v3 }
 0x14f   :  { %v1521_v2 = vpop.eup %1520 }
 0x150   :  { %v1523_v63 = vpop.eup %1522  ;;  %v400_v35 = vmul.f32 %v1521_v2, %v398_v60  ;;  %1524 = vrcp.f32 %v437_v59  ;;  %vm405_vm14 = vweird.f32 %v1521_v2  ;;  %vm443_vm7 = vweird.f32 %v437_v59 }
 0x151   :  { %v419_v55 = vmul.f32 %v1523_v63, %v417_v41  ;;  %1526 = vtanh.f32 %v393_v5  ;;  %vm424_vm15 = vweird.f32 %v1523_v63  ;;  %vm406_vm2 = vmor %vm404_vm0, %vm405_vm14  ;;  %v454_v5 = vrot.slane %v2061_v11, 6 }
 0x152   :  { %v401_v50 = vsub.f32 1.0, %v400_v35  ;;  %vm425_vm3 = vmor %vm423_vm1, %vm424_vm15  ;;  %v430_v35 = vor.u32 1.1754944e-38, %v429_v45 }
 0x153   :  { %v420_v1 = vsub.f32 1.0, %v419_v55 }
 0x154   :  { %v402_v62 = vmul.f32 %v1521_v2, %v401_v50 }
 0x155   :  { %v421_v4 = vmul.f32 %v1523_v63, %v420_v1 }
 0x156   :  { %v1525_v58 = vpop.eup %1524  ;;  %v403_v3 = vadd.f32 %v1521_v2, %v402_v62 }
 0x157   :  { %v422_v17 = vadd.f32 %v1523_v63, %v421_v4  ;;  %v439_v57 = vmul.f32 %v1525_v58, %v437_v59  ;;  %v1527_v50 = vpop.eup %1526  ;;  %vm444_vm6 = vweird.f32 %v1525_v58  ;;  %v449_v4 = vand.u32 2147483648, %v437_v59 }
 0x158   :  { %v407_v55 = vsel %vm406_vm2, %v1521_v2, %v403_v3  ;;  %v447_v2 = vand.u32 2147483647, %v437_v59  ;;  %vm445_vm8 = vmor %vm443_vm7, %vm444_vm6  ;;  %v2870_v59 = vld [vmem:[#allocation26_spill] sm:$0xff] }
 0x159   :  { %v412_v56 = vsel %vm409_vm4, %v411_v7, %v407_v55  ;;  %v426_v53 = vsel %vm425_vm3, %v1523_v63, %v422_v17  ;;  %v440_v1 = vsub.f32 1.0, %v439_v57  ;;  %v450_v45 = vor.u32 1.1754944e-38, %v449_v4 }
 0x15a   :  { %v431_v52 = vsel %vm428_vm5, %v430_v35, %v426_v53  ;;  %v457_v51 = vmul.f32 %v1527_v50, %v412_v56  ;;  %vm448_vm9 = vcmp.eq.f32.partialorder %v447_v2, 8.507059e+37  ;;  %v2869_v56 = vld [vmem:[#allocation22_spill] sm:$0xff]  ;;  %v2872_v50 = vld [vmem:[#allocation47_spill] sm:$0xff] }
 0x15b   :  { %v456_v62 = vmul.f32 %v454_v5, %v431_v52  ;;  %v441_v60 = vmul.f32 %v1525_v58, %v440_v1 }
 0x15d   :  { %v2175_v41 = vadd.f32 %v457_v51, %v456_v62  ;;  %v442_v6 = vadd.f32 %v1525_v58, %v441_v60 }
 0x15f   :  { %1528 = vtanh.f32 %v2175_v41  ;;  %v446_v11 = vsel %vm445_vm8, %v1525_v58, %v442_v6 }
 0x160   :  { %v451_v17 = vsel %vm448_vm9, %v450_v45, %v446_v11 }
 0x165   :  { %v1529_v63 = vpop.eup %1528 }
 0x166   :  { %v460_v57 = vmul.f32 %v1529_v63, %v451_v17 }
 0x168   :  { %v462_v53 = vrot.slane %v460_v57, 2 }
 0x16a   :  { %480 = vmatmul.f32.vlgmr.msra.gmra.mxu0 %v462_v53  ;;  %500 = vmatmul.f32.vlgmr.msra.gmra.mxu1 %v462_v53 }
 0x16b   :  { %520 = vmatmul.f32.vlgmr.msra.gmra.mxu2 %v462_v53  ;;  %540 = vmatmul.f32.vlgmr.msra.gmra.mxu3 %v462_v53 }
 0x16c   :  { %794 = vmatpush.msra.mxu0 %v1773_v8  ;;  %814 = vmatpush.msra.mxu1 %v2824_v9  ;;  %v2843_v8 = vld [vmem:[#allocation11_spill] sm:$0xff] }
 0x16d   :  { %834 = vmatpush.msra.mxu2 %v1777_v10  ;;  %854 = vmatpush.msra.mxu3 %v2825_v19  ;;  %v2844_v10 = vld [vmem:[#allocation19_spill] sm:$0xff] }
 0x16e   :  { %795 = vmatpush.msra.mxu0 %v1785_v12  ;;  %815 = vmatpush.msra.mxu1 %v1787_v13  ;;  %v2845_v12 = vld [vmem:[#allocation20_spill] sm:$0xff]  ;;  %v2846_v13 = vld [vmem:[#allocation21_spill] sm:$0xff] }
 0x16f   :  { %835 = vmatpush.msra.mxu2 %v1789_v14  ;;  %855 = vmatpush.msra.mxu3 %v1793_v15  ;;  %v2847_v14 = vld [vmem:[#allocation23_spill] sm:$0xff]  ;;  %v2848_v15 = vld [vmem:[#allocation24_spill] sm:$0xff] }
 0x170   :  { %796 = vmatpush.msra.mxu0 %v1797_v16  ;;  %816 = vmatpush.msra.mxu1 %v2826_v25  ;;  %v2849_v16 = vld [vmem:[#allocation25_spill] sm:$0xff] }
 0x171   :  { %836 = vmatpush.msra.mxu2 %v2827_v27  ;;  %856 = vmatpush.msra.mxu3 %v2828_v28 }
 0x172   :  { %797 = vmatpush.msra.mxu0 %v1809_v20  ;;  %817 = vmatpush.msra.mxu1 %v2843_v8  ;;  %v2850_v20 = vld [vmem:[#allocation27_spill] sm:$0xff] }
 0x173   :  { %837 = vmatpush.msra.mxu2 %v1813_v22  ;;  %857 = vmatpush.msra.mxu3 %v1817_v23  ;;  %v2852_v22 = vld [vmem:[#allocation29_spill] sm:$0xff]  ;;  %v2853_v23 = vld [vmem:[#allocation30_spill] sm:$0xff] }
 0x174   :  { %798 = vmatpush.msra.mxu0 %v2829_v31  ;;  %818 = vmatpush.msra.mxu1 %v2830_v32  ;;  %v2871_v31 = vld [vmem:[#allocation36_spill] sm:$0xff] }
 0x175   :  { %838 = vmatpush.msra.mxu2 %v1825_v26  ;;  %858 = vmatpush.msra.mxu3 %v2831_v54  ;;  %v2854_v26 = vld [vmem:[#allocation31_spill] sm:$0xff] }
 0x176   :  { %799 = vmatpush.msra.mxu0 %v2832_v18  ;;  %819 = vmatpush.msra.mxu1 %v1835_v29  ;;  %v2855_v29 = vld [vmem:[#allocation32_spill] sm:$0xff] }
 0x177   :  { %839 = vmatpush.msra.mxu2 %v1837_v30  ;;  %859 = vmatpush.msra.mxu3 %v2833_v24  ;;  %v2856_v30 = vld [vmem:[#allocation33_spill] sm:$0xff] }
 0x178   :  { %800 = vmatpush.msra.mxu0 %v2834_v21  ;;  %820 = vmatpush.msra.mxu1 %v1847_v33  ;;  %v2851_v21 = vld [vmem:[#allocation28_spill] sm:$0xff]  ;;  %v2857_v33 = vld [vmem:[#allocation34_spill] sm:$0xff] }
 0x179   :  { %840 = vmatpush.msra.mxu2 %v1849_v34  ;;  %860 = vmatpush.msra.mxu3 %v1858_v36  ;;  %v2858_v34 = vld [vmem:[#allocation35_spill] sm:$0xff]  ;;  %v2859_v36 = vld [vmem:[#allocation37_spill] sm:$0xff] }
 0x17a   :  { %801 = vmatpush.msra.mxu0 %v1862_v37  ;;  %821 = vmatpush.msra.mxu1 %v1864_v38  ;;  %v2860_v37 = vld [vmem:[#allocation38_spill] sm:$0xff]  ;;  %v2861_v38 = vld [vmem:[#allocation39_spill] sm:$0xff] }
 0x17b   :  { %841 = vmatpush.msra.mxu2 %v1866_v39  ;;  %861 = vmatpush.msra.mxu3 %v1870_v40  ;;  %v2862_v39 = vld [vmem:[#allocation40_spill] sm:$0xff]  ;;  %v2863_v40 = vld [vmem:[#allocation41_spill] sm:$0xff] }
 0x17c   :  { %802 = vmatpush.msra.mxu0 %v1875_v42  ;;  %822 = vmatpush.msra.mxu1 %v1877_v43  ;;  %v2864_v42 = vld [vmem:[#allocation42_spill] sm:$0xff]  ;;  %v2865_v43 = vld [vmem:[#allocation43_spill] sm:$0xff] }
 0x17d   :  { %842 = vmatpush.msra.mxu2 %v1879_v44  ;;  %862 = vmatpush.msra.mxu3 %v1884_v46  ;;  %v2866_v44 = vld [vmem:[#allocation44_spill] sm:$0xff]  ;;  %v2867_v46 = vld [vmem:[#allocation45_spill] sm:$0xff] }
 0x17e   :  { %803 = vmatpush.msra.mxu0 %v1888_v47  ;;  %823 = vmatpush.msra.mxu1 %v1890_v48  ;;  %v2868_v47 = vld [vmem:[#allocation46_spill] sm:$0xff] }
 0x17f   :  { %843 = vmatpush.msra.mxu2 %v1892_v49  ;;  %863 = vmatpush.msra.mxu3 %v2844_v10 }
 0x180   :  { %804 = vmatpush.msra.mxu0 %v2845_v12  ;;  %824 = vmatpush.msra.mxu1 %v2846_v13 }
 0x181   :  { %844 = vmatpush.msra.mxu2 %v2847_v14  ;;  %864 = vmatpush.msra.mxu3 %v2848_v15  ;;  %v619_v15 = vrot.slane %v2175_v41, 6 }
 0x182   :  { %805 = vmatpush.msra.mxu0 %v2849_v16  ;;  %825 = vmatpush.msra.mxu1 %v2850_v20 }
 0x183   :  { %845 = vmatpush.msra.mxu2 %v2851_v21  ;;  %865 = vmatpush.msra.mxu3 %v2852_v22 }
 0x184   :  { %806 = vmatpush.msra.mxu0 %v2853_v23  ;;  %826 = vmatpush.msra.mxu1 %v2854_v26 }
 0x185   :  { %846 = vmatpush.msra.mxu2 %v2855_v29  ;;  %866 = vmatpush.msra.mxu3 %v2856_v30 }
 0x186   :  { %807 = vmatpush.msra.mxu0 %v2857_v33  ;;  %827 = vmatpush.msra.mxu1 %v2858_v34 }
 0x187   :  { %847 = vmatpush.msra.mxu2 %v2859_v36  ;;  %867 = vmatpush.msra.mxu3 %v2860_v37 }
 0x188   :  { %808 = vmatpush.msra.mxu0 %v2861_v38  ;;  %828 = vmatpush.msra.mxu1 %v2862_v39 }
 0x189   :  { %848 = vmatpush.msra.mxu2 %v2863_v40  ;;  %868 = vmatpush.msra.mxu3 %v2864_v42 }
 0x18a   :  { %809 = vmatpush.msra.mxu0 %v2865_v43  ;;  %829 = vmatpush.msra.mxu1 %v2866_v44 }
 0x18b   :  { %849 = vmatpush.msra.mxu2 %v2867_v46  ;;  %869 = vmatpush.msra.mxu3 %v2868_v47 }
 0x1e7   :  { %v481_v48 = vpop.f32.mrf.mxu0  ;;  %v501_v49 = vpop.f32.mrf.mxu1 }
 0x1e8   :  { %v548_v51 = vrot.slane %v481_v48, 4  ;;  %v549_v52 = vrot.slane %v501_v49, 4 }
 0x1ea   :  { %v556_v58 = vadd.f32 %v548_v51, %v2869_v56  ;;  %v557_v9 = vadd.f32 %v549_v52, %v2870_v59 }
 0x1ec   :  { %v1475_v19 = vmul.f32 -1.442695, %v556_v58  ;;  %v1476_v25 = vmul.f32 -1.442695, %v557_v9 }
 0x1ee   :  { %1530 = vpow2.f32 %v1475_v19  ;;  %v541_v27 = vpop.f32.mrf.mxu3  ;;  %v521_v3 = vpop.f32.mrf.mxu2 }
 0x1ef   :  { %1532 = vpow2.f32 %v1476_v25  ;;  %v551_v28 = vrot.slane %v541_v27, 4  ;;  %v550_v7 = vrot.slane %v521_v3, 4  ;;  %v2265_v3 = vld [vmem:[#allocation3 + $0x1c8] sm:$0xff] }
 0x1f1   :  { %v559_v32 = vadd.f32 %v551_v28, %v2871_v31  ;;  %v558_v1 = vadd.f32 %v550_v7, %v2872_v50  ;;  %v2268_v7 = vld [vmem:[#allocation3 + $0x1d0] sm:$0xff] }
 0x1f3   :  { %v1477_v54 = vmul.f32 -1.442695, %v559_v32 }
 0x1f4   :  { %v1531_v18 = vpop.eup %1530 }
 0x1f5   :  { %v1533_v24 = vpop.eup %1532  ;;  %v563_v61 = vadd.f32 1.0, %v1531_v18  ;;  %1534 = vpow2.f32 %v1477_v54  ;;  %v2250_v54 = vld [vmem:[#allocation3 + $0x1e0] sm:$0xff]  ;;  %v2253_v18 = vld [vmem:[#allocation3 + $0x1e8] sm:$0xff] }
 0x1f6   :  { %v582_v0 = vadd.f32 1.0, %v1533_v24  ;;  %v2256_v24 = vld [vmem:[#allocation3 + $0x1f0] sm:$0xff] }
 0x1f7   :  { %1536 = vrcp.f32 %v563_v61  ;;  %v575_v11 = vand.u32 2147483648, %v563_v61  ;;  %v573_v17 = vand.u32 2147483647, %v563_v61  ;;  %vm569_vm12 = vweird.f32 %v563_v61 }
 0x1f8   :  { %1538 = vrcp.f32 %v582_v0  ;;  %v594_v45 = vand.u32 2147483648, %v582_v0  ;;  %v592_v53 = vand.u32 2147483647, %v582_v0  ;;  %vm588_vm13 = vweird.f32 %v582_v0 }
 0x1f9   :  { %v576_v12 = vor.u32 1.1754944e-38, %v575_v11  ;;  %vm574_vm0 = vcmp.eq.f32.partialorder %v573_v17, 8.507059e+37  ;;  %v2298_v11 = vld [vmem:[#allocation3 + $0x160] sm:$0xff]  ;;  %v2307_v17 = vld [vmem:[#allocation3 + $0x178] sm:$0xff] }
 0x1fa   :  { %v595_v16 = vor.u32 1.1754944e-38, %v594_v45  ;;  %vm593_vm1 = vcmp.eq.f32.partialorder %v592_v53, 8.507059e+37  ;;  %v2301_v45 = vld [vmem:[#allocation3 + $0x168] sm:$0xff] }
 0x1fb   :  { %v1535_v35 = vpop.eup %1534  ;;  %v2313_v53 = vld [vmem:[#allocation3 + $0x148] sm:$0xff] }
 0x1fc   :  { %v602_v55 = vadd.f32 1.0, %v1535_v35  ;;  %v2271_v35 = vld [vmem:[#allocation3 + $0x1d8] sm:$0xff] }
 0x1fd   :  { %v1537_v5 = vpop.eup %1536 }
 0x1fe   :  { %v1539_v62 = vpop.eup %1538  ;;  %v565_v60 = vmul.f32 %v1537_v5, %v563_v61  ;;  %1540 = vrcp.f32 %v602_v55  ;;  %vm570_vm10 = vweird.f32 %v1537_v5  ;;  %v614_v41 = vand.u32 2147483648, %v602_v55  ;;  %v2259_v61 = vld [vmem:[#allocation3 + $0x1f8] sm:$0xff] }
 0x1ff   :  { %v584_v6 = vmul.f32 %v1539_v62, %v582_v0  ;;  %1542 = vtanh.f32 %v558_v1  ;;  %vm589_vm11 = vweird.f32 %v1539_v62  ;;  %vm571_vm14 = vmor %vm569_vm12, %vm570_vm10  ;;  %vm608_vm3 = vweird.f32 %v602_v55  ;;  %v2262_v0 = vld [vmem:[#allocation3 + $0x1c0] sm:$0xff]  ;;  %v2280_v1 = vld [vmem:[#allocation3 + $0x1b0] sm:$0xff] }
 0x200   :  { %v566_v4 = vsub.f32 1.0, %v565_v60  ;;  %vm590_vm15 = vmor %vm588_vm13, %vm589_vm11  ;;  %v612_v58 = vand.u32 2147483647, %v602_v55  ;;  %v615_v19 = vor.u32 1.1754944e-38, %v614_v41  ;;  %v2286_v60 = vld [vmem:[#allocation3 + $0x180] sm:$0xff]  ;;  %v2367_v41 = vld [vmem:[#allocation3 + $0xd8] sm:$0xff] }
 0x201   :  { %v585_v2 = vsub.f32 1.0, %v584_v6  ;;  %v2289_v6 = vld [vmem:[#allocation3 + $0x188] sm:$0xff]  ;;  %2874 = vst [vmem:[#allocation12_spill] sm:$0xff] %v2367_v41 }
 0x202   :  { %v567_v63 = vmul.f32 %v1537_v5, %v566_v4  ;;  %vm613_vm5 = vcmp.eq.f32.partialorder %v612_v58, 8.507059e+37  ;;  %v2292_v4 = vld [vmem:[#allocation3 + $0x190] sm:$0xff]  ;;  %v2370_v58 = vld [vmem:[#allocation3 + $0xa0] sm:$0xff] }
 0x203   :  { %v586_v57 = vmul.f32 %v1539_v62, %v585_v2  ;;  %v2295_v2 = vld [vmem:[#allocation3 + $0x198] sm:$0xff]  ;;  %2875 = vst [vmem:[#allocation13_spill] sm:$0xff] %v2370_v58 }
 0x204   :  { %v1541_v8 = vpop.eup %1540  ;;  %v568_v10 = vadd.f32 %v1537_v5, %v567_v63  ;;  %v2304_v63 = vld [vmem:[#allocation3 + $0x170] sm:$0xff] }
 0x205   :  { %v587_v13 = vadd.f32 %v1539_v62, %v586_v57  ;;  %v604_v14 = vmul.f32 %v1541_v8, %v602_v55  ;;  %v1543_v21 = vpop.eup %1542  ;;  %vm609_vm2 = vweird.f32 %v1541_v8  ;;  %v2274_v55 = vld [vmem:[#allocation3 + $0x1a0] sm:$0xff] }
 0x206   :  { %v572_v20 = vsel %vm571_vm14, %v1537_v5, %v568_v10  ;;  %vm610_vm4 = vmor %vm608_vm3, %vm609_vm2  ;;  %v2277_v5 = vld [vmem:[#allocation3 + $0x1a8] sm:$0xff]  ;;  %v2310_v57 = vld [vmem:[#allocation3 + $0x140] sm:$0xff] }
 0x207   :  { %v577_v22 = vsel %vm574_vm0, %v576_v12, %v572_v20  ;;  %v591_v23 = vsel %vm590_vm15, %v1539_v62, %v587_v13  ;;  %v605_v26 = vsub.f32 1.0, %v604_v14  ;;  %v2283_v62 = vld [vmem:[#allocation3 + $0x1b8] sm:$0xff]  ;;  %v2322_v12 = vld [vmem:[#allocation3 + $0x120] sm:$0xff]  ;;  %v2325_v13 = vld [vmem:[#allocation3 + $0x128] sm:$0xff] }
 0x208   :  { %v596_v29 = vsel %vm593_vm1, %v595_v16, %v591_v23  ;;  %v622_v30 = vmul.f32 %v1543_v21, %v577_v22  ;;  %v2319_v10 = vld [vmem:[#allocation3 + $0x158] sm:$0xff]  ;;  %v2328_v14 = vld [vmem:[#allocation3 + $0x130] sm:$0xff]  ;;  %v2334_v16 = vld [vmem:[#allocation3 + $0x100] sm:$0xff] }
 0x209   :  { %v621_v48 = vmul.f32 %v619_v15, %v596_v29  ;;  %v606_v49 = vmul.f32 %v1541_v8, %v605_v26  ;;  %v2331_v15 = vld [vmem:[#allocation3 + $0x138] sm:$0xff]  ;;  %v2337_v20 = vld [vmem:[#allocation3 + $0x108] sm:$0xff]  ;;  %v2340_v21 = vld [vmem:[#allocation3 + $0x110] sm:$0xff] }
 0x20a   :  { %v2343_v22 = vld [vmem:[#allocation3 + $0x118] sm:$0xff]  ;;  %v2346_v23 = vld [vmem:[#allocation3 + $0xe0] sm:$0xff]  ;;  %v2349_v26 = vld [vmem:[#allocation3 + $0xe8] sm:$0xff] }
 0x20b   :  { %v2247_v51 = vadd.f32 %v622_v30, %v621_v48  ;;  %v607_v52 = vadd.f32 %v1541_v8, %v606_v49  ;;  %v2352_v29 = vld [vmem:[#allocation3 + $0xf0] sm:$0xff]  ;;  %v2355_v30 = vld [vmem:[#allocation3 + $0xf8] sm:$0xff]  ;;  %v2358_v48 = vld [vmem:[#allocation3 + $0xc0] sm:$0xff] }
 0x20c   :  { %v2361_v49 = vld [vmem:[#allocation3 + $0xc8] sm:$0xff] }
 0x20d   :  { %1544 = vtanh.f32 %v2247_v51  ;;  %v611_v9 = vsel %vm610_vm4, %v1541_v8, %v607_v52  ;;  %v2316_v8 = vld [vmem:[#allocation3 + $0x150] sm:$0xff] }
 0x20e   :  { %v616_v27 = vsel %vm613_vm5, %v615_v19, %v611_v9  ;;  %v2364_v52 = vld [vmem:[#allocation3 + $0xd0] sm:$0xff]  ;;  %v2373_v9 = vld [vmem:[#allocation3 + $0xa8] sm:$0xff] }
 0x20f   :  { %2873 = vst [vmem:[#allocation10_spill] sm:$0xff] %v2364_v52  ;;  %v2376_v19 = vld [vmem:[#allocation3 + $0xb0] sm:$0xff] }
 0x210   :  { %2876 = vst [vmem:[#allocation14_spill] sm:$0xff] %v2373_v9 }
 0x211   :  { %2877 = vst [vmem:[#allocation15_spill] sm:$0xff] %v2376_v19 }
 0x213   :  { %v1545_v25 = vpop.eup %1544 }
 0x214   :  { %v625_v28 = vmul.f32 %v1545_v25, %v616_v27  ;;  %v2379_v25 = vld [vmem:[#allocation3 + $0xb8] sm:$0xff]  ;;  %v2382_v27 = vld [vmem:[#allocation3 + $0x80] sm:$0xff] }
 0x215   :  { %2878 = vst [vmem:[#allocation16_spill] sm:$0xff] %v2379_v25 }
 0x216   :  { %v627_v32 = vrot.slane %v625_v28, 4  ;;  %2879 = vst [vmem:[#allocation17_spill] sm:$0xff] %v2382_v27  ;;  %v2385_v28 = vld [vmem:[#allocation3 + $0x88] sm:$0xff] }
 0x217   :  { %2880 = vst [vmem:[#allocation11_spill] sm:$0xff] %v2385_v28 }
 0x218   :  { %645 = vmatmul.f32.vlgmr.msrb.gmra.mxu0 %v627_v32  ;;  %665 = vmatmul.f32.vlgmr.msrb.gmra.mxu1 %v627_v32 }
 0x219   :  { %685 = vmatmul.f32.vlgmr.msrb.gmra.mxu2 %v627_v32  ;;  %705 = vmatmul.f32.vlgmr.msrb.gmra.mxu3 %v627_v32  ;;  %v2388_v32 = vld [vmem:[#allocation3 + $0x90] sm:$0xff] }
 0x21a   :  { %944 = vmatpush.msrb.mxu0 %v2250_v54  ;;  %964 = vmatpush.msrb.mxu1 %v2253_v18  ;;  %2881 = vst [vmem:[#allocation19_spill] sm:$0xff] %v2388_v32 }
 0x21b   :  { %984 = vmatpush.msrb.mxu2 %v2256_v24  ;;  %1004 = vmatpush.msrb.mxu3 %v2259_v61 }
 0x21c   :  { %945 = vmatpush.msrb.mxu0 %v2262_v0  ;;  %965 = vmatpush.msrb.mxu1 %v2265_v3 }
 0x21d   :  { %985 = vmatpush.msrb.mxu2 %v2268_v7  ;;  %1005 = vmatpush.msrb.mxu3 %v2271_v35 }
 0x21e   :  { %946 = vmatpush.msrb.mxu0 %v2274_v55  ;;  %966 = vmatpush.msrb.mxu1 %v2277_v5 }
 0x21f   :  { %986 = vmatpush.msrb.mxu2 %v2280_v1  ;;  %1006 = vmatpush.msrb.mxu3 %v2283_v62 }
 0x220   :  { %947 = vmatpush.msrb.mxu0 %v2286_v60  ;;  %967 = vmatpush.msrb.mxu1 %v2289_v6 }
 0x221   :  { %987 = vmatpush.msrb.mxu2 %v2292_v4  ;;  %1007 = vmatpush.msrb.mxu3 %v2295_v2 }
 0x222   :  { %948 = vmatpush.msrb.mxu0 %v2298_v11  ;;  %968 = vmatpush.msrb.mxu1 %v2301_v45 }
 0x223   :  { %988 = vmatpush.msrb.mxu2 %v2304_v63  ;;  %1008 = vmatpush.msrb.mxu3 %v2307_v17 }
 0x224   :  { %949 = vmatpush.msrb.mxu0 %v2310_v57  ;;  %969 = vmatpush.msrb.mxu1 %v2313_v53 }
 0x225   :  { %989 = vmatpush.msrb.mxu2 %v2316_v8  ;;  %1009 = vmatpush.msrb.mxu3 %v2319_v10 }
 0x226   :  { %950 = vmatpush.msrb.mxu0 %v2322_v12  ;;  %970 = vmatpush.msrb.mxu1 %v2325_v13 }
 0x227   :  { %990 = vmatpush.msrb.mxu2 %v2328_v14  ;;  %1010 = vmatpush.msrb.mxu3 %v2331_v15 }
 0x228   :  { %951 = vmatpush.msrb.mxu0 %v2334_v16  ;;  %971 = vmatpush.msrb.mxu1 %v2337_v20 }
 0x229   :  { %991 = vmatpush.msrb.mxu2 %v2340_v21  ;;  %1011 = vmatpush.msrb.mxu3 %v2343_v22 }
 0x22a   :  { %952 = vmatpush.msrb.mxu0 %v2346_v23  ;;  %972 = vmatpush.msrb.mxu1 %v2349_v26 }
 0x22b   :  { %992 = vmatpush.msrb.mxu2 %v2352_v29  ;;  %1012 = vmatpush.msrb.mxu3 %v2355_v30 }
 0x22c   :  { %953 = vmatpush.msrb.mxu0 %v2358_v48  ;;  %973 = vmatpush.msrb.mxu1 %v2361_v49 }
 0x22d   :  { %993 = vmatpush.msrb.mxu2 %v2364_v52  ;;  %1013 = vmatpush.msrb.mxu3 %v2367_v41 }
 0x22e   :  { %954 = vmatpush.msrb.mxu0 %v2370_v58  ;;  %974 = vmatpush.msrb.mxu1 %v2373_v9  ;;  %v2391_v9 = vld [vmem:[#allocation3 + $0x98] sm:$0xff] }
 0x22f   :  { %994 = vmatpush.msrb.mxu2 %v2376_v19  ;;  %1014 = vmatpush.msrb.mxu3 %v2379_v25  ;;  %2882 = vst [vmem:[#allocation20_spill] sm:$0xff] %v2391_v9  ;;  %v2394_v19 = vld [vmem:[#allocation3 + $0x60] sm:$0xff]  ;;  %v2397_v25 = vld [vmem:[#allocation3 + $0x68] sm:$0xff] }
 0x230   :  { %955 = vmatpush.msrb.mxu0 %v2382_v27  ;;  %975 = vmatpush.msrb.mxu1 %v2385_v28  ;;  %2883 = vst [vmem:[#allocation21_spill] sm:$0xff] %v2394_v19  ;;  %v2400_v27 = vld [vmem:[#allocation3 + $0x70] sm:$0xff]  ;;  %v2403_v28 = vld [vmem:[#allocation3 + $0x78] sm:$0xff] }
 0x231   :  { %995 = vmatpush.msrb.mxu2 %v2388_v32  ;;  %1015 = vmatpush.msrb.mxu3 %v2391_v9  ;;  %2884 = vst [vmem:[#allocation23_spill] sm:$0xff] %v2397_v25 }
 0x232   :  { %956 = vmatpush.msrb.mxu0 %v2394_v19  ;;  %976 = vmatpush.msrb.mxu1 %v2397_v25  ;;  %2885 = vst [vmem:[#allocation24_spill] sm:$0xff] %v2400_v27 }
 0x233   :  { %996 = vmatpush.msrb.mxu2 %v2400_v27  ;;  %2886 = vst [vmem:[#allocation25_spill] sm:$0xff] %v2403_v28  ;;  %1016 = vmatpush.msrb.mxu3 %v2403_v28 }
 0x234   :  { %957 = vmatpush.msrb.mxu0 %v2857_v33  ;;  %977 = vmatpush.msrb.mxu1 %v2858_v34 }
 0x235   :  { %997 = vmatpush.msrb.mxu2 %v2859_v36  ;;  %1017 = vmatpush.msrb.mxu3 %v2860_v37 }
 0x236   :  { %958 = vmatpush.msrb.mxu0 %v2861_v38  ;;  %978 = vmatpush.msrb.mxu1 %v2862_v39 }
 0x237   :  { %998 = vmatpush.msrb.mxu2 %v2863_v40  ;;  %1018 = vmatpush.msrb.mxu3 %v2864_v42 }
 0x238   :  { %959 = vmatpush.msrb.mxu0 %v2865_v43  ;;  %979 = vmatpush.msrb.mxu1 %v2866_v44 }
 0x239   :  { %999 = vmatpush.msrb.mxu2 %v2867_v46  ;;  %1019 = vmatpush.msrb.mxu3 %v2868_v47 }
 0x295   :  { %v646_v33 = vpop.f32.mrf.mxu0  ;;  %v666_v34 = vpop.f32.mrf.mxu1 }
 0x296   :  { %v713_v36 = vrot.slane %v646_v33, 2  ;;  %v714_v37 = vrot.slane %v666_v34, 2 }
 0x298   :  { %v721_v38 = vadd.f32 %v713_v36, %v2869_v56  ;;  %v722_v39 = vadd.f32 %v714_v37, %v2870_v59 }
 0x29a   :  { %v1478_v28 = vmul.f32 -1.442695, %v721_v38  ;;  %v1479_v40 = vmul.f32 -1.442695, %v722_v39 }
 0x29c   :  { %1546 = vpow2.f32 %v1478_v28  ;;  %v706_v42 = vpop.f32.mrf.mxu3  ;;  %v686_v33 = vpop.f32.mrf.mxu2 }
 0x29d   :  { %1548 = vpow2.f32 %v1479_v40  ;;  %v716_v43 = vrot.slane %v706_v42, 2  ;;  %v715_v56 = vrot.slane %v686_v33, 2 }
 0x29f   :  { %v724_v44 = vadd.f32 %v716_v43, %v2871_v31  ;;  %v723_v28 = vadd.f32 %v715_v56, %v2872_v50 }
 0x2a1   :  { %v1480_v27 = vmul.f32 -1.442695, %v724_v44 }
 0x2a2   :  { %v1547_v46 = vpop.eup %1546 }
 0x2a3   :  { %v1549_v25 = vpop.eup %1548  ;;  %v728_v47 = vadd.f32 1.0, %v1547_v46  ;;  %1550 = vpow2.f32 %v1480_v27 }
 0x2a4   :  { %v747_v19 = vadd.f32 1.0, %v1549_v25 }
 0x2a5   :  { %1552 = vrcp.f32 %v728_v47  ;;  %v740_v42 = vand.u32 2147483648, %v728_v47  ;;  %v738_v25 = vand.u32 2147483647, %v728_v47  ;;  %vm734_vm8 = vweird.f32 %v728_v47 }
 0x2a6   :  { %1554 = vrcp.f32 %v747_v19  ;;  %v759_v43 = vand.u32 2147483648, %v747_v19  ;;  %v757_v46 = vand.u32 2147483647, %v747_v19  ;;  %vm753_vm9 = vweird.f32 %v747_v19 }
 0x2a7   :  { %v741_v50 = vor.u32 1.1754944e-38, %v740_v42  ;;  %vm739_vm12 = vcmp.eq.f32.partialorder %v738_v25, 8.507059e+37 }
 0x2a8   :  { %vm758_vm13 = vcmp.eq.f32.partialorder %v757_v46, 8.507059e+37  ;;  %v2891_v46 = vld [vmem:[#allocation15_spill] sm:$0xff] }
 0x2a9   :  { %v1551_v34 = vpop.eup %1550 }
 0x2aa   :  { %v767_v59 = vadd.f32 1.0, %v1551_v34 }
 0x2ab   :  { %v1553_v36 = vpop.eup %1552 }
 0x2ac   :  { %v1555_v37 = vpop.eup %1554  ;;  %v730_v38 = vmul.f32 %v1553_v36, %v728_v47  ;;  %1556 = vrcp.f32 %v767_v59  ;;  %vm735_vm6 = vweird.f32 %v1553_v36  ;;  %vm773_vm15 = vweird.f32 %v767_v59 }
 0x2ad   :  { %v749_v39 = vmul.f32 %v1555_v37, %v747_v19  ;;  %1558 = vtanh.f32 %v723_v28  ;;  %vm754_vm7 = vweird.f32 %v1555_v37  ;;  %vm736_vm10 = vmor %vm734_vm8, %vm735_vm6 }
 0x2ae   :  { %v731_v31 = vsub.f32 1.0, %v730_v38  ;;  %v784_v38 = vrot.slane %v2247_v51, 6  ;;  %vm755_vm11 = vmor %vm753_vm9, %vm754_vm7  ;;  %v779_v51 = vand.u32 2147483648, %v767_v59 }
 0x2af   :  { %v750_v40 = vsub.f32 1.0, %v749_v39  ;;  %v760_v39 = vor.u32 1.1754944e-38, %v759_v43  ;;  %v777_v43 = vand.u32 2147483647, %v767_v59 }
 0x2b0   :  { %v732_v27 = vmul.f32 %v1553_v36, %v731_v31  ;;  %v780_v25 = vor.u32 1.1754944e-38, %v779_v51  ;;  %v2487_v51 = vld [vmem:[#allocation3 + $0x58] sm:$0xff] }
 0x2b1   :  { %v751_v44 = vmul.f32 %v1555_v37, %v750_v40  ;;  %vm778_vm1 = vcmp.eq.f32.partialorder %v777_v43, 8.507059e+37  ;;  %2904 = vst [vmem:[#allocation30_spill] sm:$0xff] %v2487_v51  ;;  %v2490_v43 = vld [vmem:[#allocation3 + $0x20] sm:$0xff] }
 0x2b2   :  { %v1557_v33 = vpop.eup %1556  ;;  %v733_v34 = vadd.f32 %v1553_v36, %v732_v27  ;;  %2905 = vst [vmem:[#allocation31_spill] sm:$0xff] %v2490_v43 }
 0x2b3   :  { %v752_v56 = vadd.f32 %v1555_v37, %v751_v44  ;;  %v769_v9 = vmul.f32 %v1557_v33, %v767_v59  ;;  %v1559_v31 = vpop.eup %1558  ;;  %vm774_vm14 = vweird.f32 %v1557_v33  ;;  %v2890_v59 = vld [vmem:[#allocation14_spill] sm:$0xff] }
 0x2b4   :  { %v737_v28 = vsel %vm736_vm10, %v1553_v36, %v733_v34  ;;  %vm775_vm0 = vmor %vm773_vm15, %vm774_vm14  ;;  %v2893_v34 = vld [vmem:[#allocation17_spill] sm:$0xff] }
 0x2b5   :  { %v742_v32 = vsel %vm739_vm12, %v741_v50, %v737_v28  ;;  %v756_v58 = vsel %vm755_vm11, %v1555_v37, %v752_v56  ;;  %v770_v40 = vsub.f32 1.0, %v769_v9  ;;  %v2894_v50 = vld [vmem:[#allocation11_spill] sm:$0xff] }
 0x2b6   :  { %v761_v41 = vsel %vm758_vm13, %v760_v39, %v756_v58  ;;  %v787_v52 = vmul.f32 %v1559_v31, %v742_v32  ;;  %v2889_v32 = vld [vmem:[#allocation13_spill] sm:$0xff]  ;;  %v2895_v56 = vld [vmem:[#allocation19_spill] sm:$0xff]  ;;  %v2899_v31 = vld [vmem:[#allocation24_spill] sm:$0xff] }
 0x2b7   :  { %v786_v27 = vmul.f32 %v784_v38, %v761_v41  ;;  %v771_v47 = vmul.f32 %v1557_v33, %v770_v40  ;;  %v2888_v41 = vld [vmem:[#allocation12_spill] sm:$0xff]  ;;  %v2897_v39 = vld [vmem:[#allocation21_spill] sm:$0xff]  ;;  %v2898_v28 = vld [vmem:[#allocation23_spill] sm:$0xff] }
 0x2b8   :  { %v2896_v38 = vld [vmem:[#allocation20_spill] sm:$0xff]  ;;  %v2900_v40 = vld [vmem:[#allocation25_spill] sm:$0xff] }
 0x2b9   :  { %v2423_v19 = vadd.f32 %v787_v52, %v786_v27  ;;  %v772_v42 = vadd.f32 %v1557_v33, %v771_v47  ;;  %v2887_v52 = vld [vmem:[#allocation10_spill] sm:$0xff]  ;;  %v2481_v47 = vld [vmem:[#allocation3 + $0x48] sm:$0xff] }
 0x2ba   :  { %v2478_v27 = vld [vmem:[#allocation3 + $0x40] sm:$0xff]  ;;  %2902 = vst [vmem:[#allocation28_spill] sm:$0xff] %v2481_v47 }
 0x2bb   :  { %1560 = vtanh.f32 %v2423_v19  ;;  %v776_v36 = vsel %vm775_vm0, %v1557_v33, %v772_v42  ;;  %v2892_v33 = vld [vmem:[#allocation16_spill] sm:$0xff]  ;;  %2901 = vst [vmem:[#allocation27_spill] sm:$0xff] %v2478_v27 }
 0x2bc   :  { %v781_v44 = vsel %vm778_vm1, %v780_v25, %v776_v36  ;;  %v2484_v42 = vld [vmem:[#allocation3 + $0x50] sm:$0xff]  ;;  %v2493_v36 = vld [vmem:[#allocation3 + $0x28] sm:$0xff] }
 0x2bd   :  { %2903 = vst [vmem:[#allocation29_spill] sm:$0xff] %v2484_v42  ;;  %v2496_v25 = vld [vmem:[#allocation3 + $0x30] sm:$0xff] }
 0x2be   :  { %2906 = vst [vmem:[#allocation32_spill] sm:$0xff] %v2493_v36 }
 0x2bf   :  { %2907 = vst [vmem:[#allocation33_spill] sm:$0xff] %v2496_v25 }
 0x2c1   :  { %v1561_v37 = vpop.eup %1560 }
 0x2c2   :  { %v790_v9 = vmul.f32 %v1561_v37, %v781_v44  ;;  %v2499_v37 = vld [vmem:[#allocation3 + $0x38] sm:$0xff]  ;;  %v2502_v44 = vld [vmem:[#allocation3] sm:$0xff] }
 0x2c3   :  { %2908 = vst [vmem:[#allocation34_spill] sm:$0xff] %v2499_v37 }
 0x2c4   :  { %v792_v58 = vrot.slane %v790_v9, 6  ;;  %2909 = vst [vmem:[#allocation35_spill] sm:$0xff] %v2502_v44  ;;  %v2505_v9 = vld [vmem:[#allocation3 + $0x8] sm:$0xff] }
 0x2c5   :  { %2910 = vst [vmem:[#allocation37_spill] sm:$0xff] %v2505_v9 }
 0x2c6   :  { %810 = vmatmul.f32.vlgmr.msra.gmra.mxu0 %v792_v58  ;;  %830 = vmatmul.f32.vlgmr.msra.gmra.mxu1 %v792_v58 }
 0x2c7   :  { %850 = vmatmul.f32.vlgmr.msra.gmra.mxu2 %v792_v58  ;;  %870 = vmatmul.f32.vlgmr.msra.gmra.mxu3 %v792_v58  ;;  %v2508_v58 = vld [vmem:[#allocation3 + $0x10] sm:$0xff] }
 0x2c8   :  { %1109 = vmatpush.msra.mxu0 %v2250_v54  ;;  %1129 = vmatpush.msra.mxu1 %v2253_v18  ;;  %2911 = vst [vmem:[#allocation38_spill] sm:$0xff] %v2508_v58 }
 0x2c9   :  { %1149 = vmatpush.msra.mxu2 %v2256_v24  ;;  %1169 = vmatpush.msra.mxu3 %v2259_v61 }
 0x2ca   :  { %1110 = vmatpush.msra.mxu0 %v2262_v0  ;;  %1130 = vmatpush.msra.mxu1 %v2265_v3 }
 0x2cb   :  { %1150 = vmatpush.msra.mxu2 %v2268_v7  ;;  %1170 = vmatpush.msra.mxu3 %v2271_v35 }
 0x2cc   :  { %1111 = vmatpush.msra.mxu0 %v2274_v55  ;;  %1131 = vmatpush.msra.mxu1 %v2277_v5 }
 0x2cd   :  { %1151 = vmatpush.msra.mxu2 %v2280_v1  ;;  %1171 = vmatpush.msra.mxu3 %v2283_v62 }
 0x2ce   :  { %1112 = vmatpush.msra.mxu0 %v2286_v60  ;;  %1132 = vmatpush.msra.mxu1 %v2289_v6 }
 0x2cf   :  { %1152 = vmatpush.msra.mxu2 %v2292_v4  ;;  %1172 = vmatpush.msra.mxu3 %v2295_v2 }
 0x2d0   :  { %1113 = vmatpush.msra.mxu0 %v2298_v11  ;;  %1133 = vmatpush.msra.mxu1 %v2301_v45 }
 0x2d1   :  { %1153 = vmatpush.msra.mxu2 %v2304_v63  ;;  %1173 = vmatpush.msra.mxu3 %v2307_v17 }
 0x2d2   :  { %1114 = vmatpush.msra.mxu0 %v2310_v57  ;;  %1134 = vmatpush.msra.mxu1 %v2313_v53 }
 0x2d3   :  { %1154 = vmatpush.msra.mxu2 %v2316_v8  ;;  %1174 = vmatpush.msra.mxu3 %v2319_v10 }
 0x2d4   :  { %1115 = vmatpush.msra.mxu0 %v2322_v12  ;;  %1135 = vmatpush.msra.mxu1 %v2325_v13 }
 0x2d5   :  { %1155 = vmatpush.msra.mxu2 %v2328_v14  ;;  %1175 = vmatpush.msra.mxu3 %v2331_v15 }
 0x2d6   :  { %1116 = vmatpush.msra.mxu0 %v2334_v16  ;;  %1136 = vmatpush.msra.mxu1 %v2337_v20 }
 0x2d7   :  { %1156 = vmatpush.msra.mxu2 %v2340_v21  ;;  %1176 = vmatpush.msra.mxu3 %v2343_v22 }
 0x2d8   :  { %1117 = vmatpush.msra.mxu0 %v2346_v23  ;;  %1137 = vmatpush.msra.mxu1 %v2349_v26 }
 0x2d9   :  { %1157 = vmatpush.msra.mxu2 %v2352_v29  ;;  %1177 = vmatpush.msra.mxu3 %v2355_v30 }
 0x2da   :  { %1118 = vmatpush.msra.mxu0 %v2358_v48  ;;  %1138 = vmatpush.msra.mxu1 %v2361_v49 }
 0x2db   :  { %1158 = vmatpush.msra.mxu2 %v2887_v52  ;;  %1178 = vmatpush.msra.mxu3 %v2888_v41 }
 0x2dc   :  { %1119 = vmatpush.msra.mxu0 %v2889_v32  ;;  %1139 = vmatpush.msra.mxu1 %v2890_v59 }
 0x2dd   :  { %1159 = vmatpush.msra.mxu2 %v2891_v46  ;;  %1179 = vmatpush.msra.mxu3 %v2892_v33 }
 0x2de   :  { %1120 = vmatpush.msra.mxu0 %v2893_v34  ;;  %1140 = vmatpush.msra.mxu1 %v2894_v50 }
 0x2df   :  { %1160 = vmatpush.msra.mxu2 %v2895_v56  ;;  %1180 = vmatpush.msra.mxu3 %v2896_v38 }
 0x2e0   :  { %1121 = vmatpush.msra.mxu0 %v2897_v39  ;;  %1141 = vmatpush.msra.mxu1 %v2898_v28  ;;  %v2921_v39 = vld [vmem:[#allocation8_spill] sm:$0xff] }
 0x2e1   :  { %1161 = vmatpush.msra.mxu2 %v2899_v31  ;;  %1181 = vmatpush.msra.mxu3 %v2900_v40 }
 0x2e2   :  { %1122 = vmatpush.msra.mxu0 %v2478_v27  ;;  %1142 = vmatpush.msra.mxu1 %v2481_v47 }
 0x2e3   :  { %1162 = vmatpush.msra.mxu2 %v2484_v42  ;;  %1182 = vmatpush.msra.mxu3 %v2487_v51  ;;  %v2915_v51 = vld [vmem:[#allocation6_spill] sm:$0xff] }
 0x2e4   :  { %1123 = vmatpush.msra.mxu0 %v2490_v43  ;;  %1143 = vmatpush.msra.mxu1 %v2493_v36  ;;  %v2511_v36 = vld [vmem:[#allocation3 + $0x18] sm:$0xff] }
 0x2e5   :  { %1163 = vmatpush.msra.mxu2 %v2496_v25  ;;  %1183 = vmatpush.msra.mxu3 %v2499_v37  ;;  %2912 = vst [vmem:[#allocation39_spill] sm:$0xff] %v2511_v36  ;;  %v2913_v25 = vld [vmem:[#allocation18_spill] sm:$0xff] }
 0x2e6   :  { %1124 = vmatpush.msra.mxu0 %v2502_v44  ;;  %1144 = vmatpush.msra.mxu1 %v2505_v9  ;;  %v2914_v43 = vperm.slane %v2913_v25, 0  ;;  %v2917_v42 = vperm.slane %v2913_v25, 1  ;;  %v2918_v44 = vld [vmem:[#allocation7_spill] sm:$0xff] }
 0x2e7   :  { %1164 = vmatpush.msra.mxu2 %v2508_v58  ;;  %1184 = vmatpush.msra.mxu3 %v2511_v36  ;;  %v2920_v36 = vperm.slane %v2913_v25, 3 }
 0x2e8   :  { %v2517_v37 = vadd.f32 %v2915_v51, %v2914_v43  ;;  %v2522_v47 = vadd.f32 %v2918_v44, %v2917_v42 }
 0x2e9   :  { %v2529_v38 = vadd.f32 %v2921_v39, %v2920_v36 }
 0x2ea   :  { %2916 = vst [vmem:[#allocation40_spill] sm:$0xff] %v2517_v37 }
 0x2eb   :  { %2919 = vst [vmem:[#allocation41_spill] sm:$0xff] %v2522_v47 }
 0x2ec   :  { %2922 = vst [vmem:[#allocation42_spill] sm:$0xff] %v2529_v38 }
 0x343   :  { %v811_v27 = vpop.f32.mrf.mxu0  ;;  %v831_v9 = vpop.f32.mrf.mxu1 }
 0x344   :  { %v874_v40 = vadd.f32 %v811_v27, %v2517_v37  ;;  %v875_v58 = vadd.f32 %v831_v9, %v2522_v47 }
 0x346   :  { %v1481_v31 = vmul.f32 -1.442695, %v874_v40  ;;  %v1482_v28 = vmul.f32 -1.442695, %v875_v58  ;;  %v2924_v58 = vld [vmem:[#allocation9_spill] sm:$0xff] }
 0x348   :  { %1562 = vpow2.f32 %v1481_v31  ;;  %v2923_v31 = vperm.slane %v2913_v25, 2 }
 0x349   :  { %1564 = vpow2.f32 %v1482_v28 }
 0x34a   :  { %v871_v51 = vpop.f32.mrf.mxu3  ;;  %v851_v40 = vpop.f32.mrf.mxu2  ;;  %v2535_v47 = vadd.f32 %v2924_v58, %v2923_v31 }
 0x34b   :  { %v877_v43 = vadd.f32 %v871_v51, %v2529_v38 }
 0x34c   :  { %2925 = vst [vmem:[#allocation43_spill] sm:$0xff] %v2535_v47  ;;  %v876_v36 = vadd.f32 %v851_v40, %v2535_v47 }
 0x34d   :  { %v1483_v42 = vmul.f32 -1.442695, %v877_v43 }
 0x34e   :  { %v1563_v44 = vpop.eup %1562 }
 0x34f   :  { %v1565_v56 = vpop.eup %1564  ;;  %v881_v50 = vadd.f32 1.0, %v1563_v44  ;;  %1566 = vpow2.f32 %v1483_v42 }
 0x350   :  { %v900_v27 = vadd.f32 1.0, %v1565_v56 }
 0x351   :  { %1568 = vrcp.f32 %v881_v50  ;;  %v893_v56 = vand.u32 2147483648, %v881_v50  ;;  %v891_v33 = vand.u32 2147483647, %v881_v50  ;;  %vm887_vm4 = vweird.f32 %v881_v50 }
 0x352   :  { %1570 = vrcp.f32 %v900_v27  ;;  %v912_v37 = vand.u32 2147483648, %v900_v27  ;;  %v910_v31 = vand.u32 2147483647, %v900_v27  ;;  %vm906_vm5 = vweird.f32 %v900_v27 }
 0x353   :  { %v894_v40 = vor.u32 1.1754944e-38, %v893_v56  ;;  %vm892_vm8 = vcmp.eq.f32.partialorder %v891_v33, 8.507059e+37 }
 0x354   :  { %vm911_vm9 = vcmp.eq.f32.partialorder %v910_v31, 8.507059e+37 }
 0x355   :  { %v1567_v9 = vpop.eup %1566 }
 0x356   :  { %v920_v39 = vadd.f32 1.0, %v1567_v9 }
 0x357   :  { %v1569_v28 = vpop.eup %1568 }
 0x358   :  { %v1571_v51 = vpop.eup %1570  ;;  %v883_v43 = vmul.f32 %v1569_v28, %v881_v50  ;;  %1572 = vrcp.f32 %v920_v39  ;;  %vm888_vm2 = vweird.f32 %v1569_v28  ;;  %vm926_vm11 = vweird.f32 %v920_v39 }
 0x359   :  { %v902_v38 = vmul.f32 %v1571_v51, %v900_v27  ;;  %1574 = vtanh.f32 %v876_v36  ;;  %vm907_vm3 = vweird.f32 %v1571_v51  ;;  %vm889_vm6 = vmor %vm887_vm4, %vm888_vm2  ;;  %v937_v36 = vrot.slane %v2423_v19, 6 }
 0x35a   :  { %v884_v44 = vsub.f32 1.0, %v883_v43  ;;  %vm908_vm7 = vmor %vm906_vm5, %vm907_vm3  ;;  %v913_v43 = vor.u32 1.1754944e-38, %v912_v37  ;;  %v932_v37 = vand.u32 2147483648, %v920_v39  ;;  %v930_v33 = vand.u32 2147483647, %v920_v39 }
 0x35b   :  { %v903_v42 = vsub.f32 1.0, %v902_v38 }
 0x35c   :  { %v885_v34 = vmul.f32 %v1569_v28, %v884_v44  ;;  %vm931_vm13 = vcmp.eq.f32.partialorder %v930_v33, 8.507059e+37 }
 0x35d   :  { %v904_v25 = vmul.f32 %v1571_v51, %v903_v42 }
 0x35e   :  { %v1573_v58 = vpop.eup %1572  ;;  %v886_v9 = vadd.f32 %v1569_v28, %v885_v34 }
 0x35f   :  { %v905_v47 = vadd.f32 %v1571_v51, %v904_v25  ;;  %v922_v46 = vmul.f32 %v1573_v58, %v920_v39  ;;  %v1575_v44 = vpop.eup %1574  ;;  %vm927_vm10 = vweird.f32 %v1573_v58 }
 0x360   :  { %v890_v38 = vsel %vm889_vm6, %v1569_v28, %v886_v9  ;;  %vm928_vm12 = vmor %vm926_vm11, %vm927_vm10  ;;  %v933_v28 = vor.u32 1.1754944e-38, %v932_v37 }
 0x361   :  { %v895_v59 = vsel %vm892_vm8, %v894_v40, %v890_v38  ;;  %v909_v32 = vsel %vm908_vm7, %v1571_v51, %v905_v47  ;;  %v923_v42 = vsub.f32 1.0, %v922_v46 }
 0x362   :  { %v914_v41 = vsel %vm911_vm9, %v913_v43, %v909_v32  ;;  %v940_v52 = vmul.f32 %v1575_v44, %v895_v59 }
 0x363   :  { %v939_v34 = vmul.f32 %v937_v36, %v914_v41  ;;  %v924_v50 = vmul.f32 %v1573_v58, %v923_v42  ;;  %v2955_v36 = vld [vmem:[#allocation43_spill] sm:$0xff] }
 0x365   :  { %v2539_v27 = vadd.f32 %v940_v52, %v939_v34  ;;  %v925_v56 = vadd.f32 %v1573_v58, %v924_v50  ;;  %v2954_v52 = vld [vmem:[#allocation42_spill] sm:$0xff] }
 0x367   :  { %1576 = vtanh.f32 %v2539_v27  ;;  %v929_v19 = vsel %vm928_vm12, %v1573_v58, %v925_v56 }
 0x368   :  { %v934_v51 = vsel %vm931_vm13, %v933_v28, %v929_v19 }
 0x36d   :  { %v1577_v47 = vpop.eup %1576 }
 0x36e   :  { %v943_v46 = vmul.f32 %v1577_v47, %v934_v51 }
 0x370   :  { %960 = vmatmul.f32.vlgmr.msrb.gmra.mxu0 %v943_v46  ;;  %980 = vmatmul.f32.vlgmr.msrb.gmra.mxu1 %v943_v46 }
 0x371   :  { %1000 = vmatmul.f32.vlgmr.msrb.gmra.mxu2 %v943_v46  ;;  %1020 = vmatmul.f32.vlgmr.msrb.gmra.mxu3 %v943_v46 }
 0x372   :  { %1274 = vmatpush.msrb.mxu0 %v2250_v54  ;;  %1294 = vmatpush.msrb.mxu1 %v2253_v18  ;;  %v2926_v54 = vld [vmem:[#allocation10_spill] sm:$0xff]  ;;  %v2927_v18 = vld [vmem:[#allocation12_spill] sm:$0xff] }
 0x373   :  { %1314 = vmatpush.msrb.mxu2 %v2256_v24  ;;  %1334 = vmatpush.msrb.mxu3 %v2259_v61  ;;  %v2928_v24 = vld [vmem:[#allocation13_spill] sm:$0xff]  ;;  %v2929_v61 = vld [vmem:[#allocation14_spill] sm:$0xff] }
 0x374   :  { %1275 = vmatpush.msrb.mxu0 %v2262_v0  ;;  %1295 = vmatpush.msrb.mxu1 %v2265_v3  ;;  %v2930_v0 = vld [vmem:[#allocation15_spill] sm:$0xff]  ;;  %v2931_v3 = vld [vmem:[#allocation16_spill] sm:$0xff] }
 0x375   :  { %1315 = vmatpush.msrb.mxu2 %v2268_v7  ;;  %1335 = vmatpush.msrb.mxu3 %v2271_v35  ;;  %v2932_v7 = vld [vmem:[#allocation17_spill] sm:$0xff]  ;;  %v2933_v35 = vld [vmem:[#allocation11_spill] sm:$0xff] }
 0x376   :  { %1276 = vmatpush.msrb.mxu0 %v2274_v55  ;;  %1296 = vmatpush.msrb.mxu1 %v2277_v5  ;;  %v2934_v55 = vld [vmem:[#allocation19_spill] sm:$0xff]  ;;  %v2935_v5 = vld [vmem:[#allocation20_spill] sm:$0xff] }
 0x377   :  { %1316 = vmatpush.msrb.mxu2 %v2280_v1  ;;  %1336 = vmatpush.msrb.mxu3 %v2283_v62  ;;  %v2936_v1 = vld [vmem:[#allocation21_spill] sm:$0xff]  ;;  %v2937_v62 = vld [vmem:[#allocation23_spill] sm:$0xff] }
 0x378   :  { %1277 = vmatpush.msrb.mxu0 %v2286_v60  ;;  %1297 = vmatpush.msrb.mxu1 %v2289_v6  ;;  %v2938_v60 = vld [vmem:[#allocation24_spill] sm:$0xff]  ;;  %v2939_v6 = vld [vmem:[#allocation25_spill] sm:$0xff] }
 0x379   :  { %1317 = vmatpush.msrb.mxu2 %v2292_v4  ;;  %1337 = vmatpush.msrb.mxu3 %v2295_v2  ;;  %v2940_v4 = vld [vmem:[#allocation27_spill] sm:$0xff]  ;;  %v2941_v2 = vld [vmem:[#allocation28_spill] sm:$0xff] }
 0x37a   :  { %1278 = vmatpush.msrb.mxu0 %v2298_v11  ;;  %1298 = vmatpush.msrb.mxu1 %v2301_v45  ;;  %v2942_v11 = vld [vmem:[#allocation29_spill] sm:$0xff]  ;;  %v2943_v45 = vld [vmem:[#allocation30_spill] sm:$0xff] }
 0x37b   :  { %1318 = vmatpush.msrb.mxu2 %v2304_v63  ;;  %1338 = vmatpush.msrb.mxu3 %v2307_v17  ;;  %v2944_v63 = vld [vmem:[#allocation31_spill] sm:$0xff]  ;;  %v2945_v17 = vld [vmem:[#allocation32_spill] sm:$0xff] }
 0x37c   :  { %1279 = vmatpush.msrb.mxu0 %v2310_v57  ;;  %1299 = vmatpush.msrb.mxu1 %v2313_v53  ;;  %v2946_v57 = vld [vmem:[#allocation33_spill] sm:$0xff]  ;;  %v2947_v53 = vld [vmem:[#allocation34_spill] sm:$0xff] }
 0x37d   :  { %1319 = vmatpush.msrb.mxu2 %v2316_v8  ;;  %1339 = vmatpush.msrb.mxu3 %v2319_v10  ;;  %v2948_v8 = vld [vmem:[#allocation35_spill] sm:$0xff]  ;;  %v2949_v10 = vld [vmem:[#allocation37_spill] sm:$0xff] }
 0x37e   :  { %1280 = vmatpush.msrb.mxu0 %v2322_v12  ;;  %1300 = vmatpush.msrb.mxu1 %v2325_v13  ;;  %v2950_v12 = vld [vmem:[#allocation38_spill] sm:$0xff]  ;;  %v2951_v13 = vld [vmem:[#allocation39_spill] sm:$0xff] }
 0x37f   :  { %1320 = vmatpush.msrb.mxu2 %v2328_v14  ;;  %1340 = vmatpush.msrb.mxu3 %v2331_v15 }
 0x380   :  { %1281 = vmatpush.msrb.mxu0 %v2334_v16  ;;  %1301 = vmatpush.msrb.mxu1 %v2337_v20 }
 0x381   :  { %1321 = vmatpush.msrb.mxu2 %v2340_v21  ;;  %1341 = vmatpush.msrb.mxu3 %v2343_v22  ;;  %v2952_v21 = vld [vmem:[#allocation40_spill] sm:$0xff] }
 0x382   :  { %1282 = vmatpush.msrb.mxu0 %v2346_v23  ;;  %1302 = vmatpush.msrb.mxu1 %v2349_v26  ;;  %v2953_v23 = vld [vmem:[#allocation41_spill] sm:$0xff] }
 0x383   :  { %1322 = vmatpush.msrb.mxu2 %v2352_v29  ;;  %1342 = vmatpush.msrb.mxu3 %v2355_v30 }
 0x384   :  { %1283 = vmatpush.msrb.mxu0 %v2358_v48  ;;  %1303 = vmatpush.msrb.mxu1 %v2361_v49 }
 0x385   :  { %1323 = vmatpush.msrb.mxu2 %v2926_v54  ;;  %1343 = vmatpush.msrb.mxu3 %v2927_v18 }
 0x386   :  { %1284 = vmatpush.msrb.mxu0 %v2928_v24  ;;  %1304 = vmatpush.msrb.mxu1 %v2929_v61 }
 0x387   :  { %1324 = vmatpush.msrb.mxu2 %v2930_v0  ;;  %1344 = vmatpush.msrb.mxu3 %v2931_v3  ;;  %v1099_v3 = vrot.slane %v2539_v27, 6 }
 0x388   :  { %1285 = vmatpush.msrb.mxu0 %v2932_v7  ;;  %1305 = vmatpush.msrb.mxu1 %v2933_v35 }
 0x389   :  { %1325 = vmatpush.msrb.mxu2 %v2934_v55  ;;  %1345 = vmatpush.msrb.mxu3 %v2935_v5 }
 0x38a   :  { %1286 = vmatpush.msrb.mxu0 %v2936_v1  ;;  %1306 = vmatpush.msrb.mxu1 %v2937_v62 }
 0x38b   :  { %1326 = vmatpush.msrb.mxu2 %v2938_v60  ;;  %1346 = vmatpush.msrb.mxu3 %v2939_v6 }
 0x38c   :  { %1287 = vmatpush.msrb.mxu0 %v2940_v4  ;;  %1307 = vmatpush.msrb.mxu1 %v2941_v2 }
 0x38d   :  { %1327 = vmatpush.msrb.mxu2 %v2942_v11  ;;  %1347 = vmatpush.msrb.mxu3 %v2943_v45 }
 0x38e   :  { %1288 = vmatpush.msrb.mxu0 %v2944_v63  ;;  %1308 = vmatpush.msrb.mxu1 %v2945_v17 }
 0x38f   :  { %1328 = vmatpush.msrb.mxu2 %v2946_v57  ;;  %1348 = vmatpush.msrb.mxu3 %v2947_v53 }
 0x390   :  { %1289 = vmatpush.msrb.mxu0 %v2948_v8  ;;  %1309 = vmatpush.msrb.mxu1 %v2949_v10 }
 0x391   :  { %1329 = vmatpush.msrb.mxu2 %v2950_v12  ;;  %1349 = vmatpush.msrb.mxu3 %v2951_v13 }
 0x3ed   :  { %v961_v14 = vpop.f32.mrf.mxu0  ;;  %v981_v15 = vpop.f32.mrf.mxu1 }
 0x3ee   :  { %v1028_v16 = vrot.slane %v961_v14, 6  ;;  %v1029_v20 = vrot.slane %v981_v15, 6 }
 0x3f0   :  { %v1036_v22 = vadd.f32 %v1028_v16, %v2952_v21  ;;  %v1037_v26 = vadd.f32 %v1029_v20, %v2953_v23 }
 0x3f2   :  { %v1484_v29 = vmul.f32 -1.442695, %v1036_v22  ;;  %v1485_v30 = vmul.f32 -1.442695, %v1037_v26 }
 0x3f4   :  { %1578 = vpow2.f32 %v1484_v29  ;;  %v1021_v48 = vpop.f32.mrf.mxu3  ;;  %v1001_v58 = vpop.f32.mrf.mxu2 }
 0x3f5   :  { %1580 = vpow2.f32 %v1485_v30  ;;  %v1031_v49 = vrot.slane %v1021_v48, 6  ;;  %v1030_v9 = vrot.slane %v1001_v58, 6 }
 0x3f7   :  { %v1039_v41 = vadd.f32 %v1031_v49, %v2954_v52  ;;  %v1038_v44 = vadd.f32 %v1030_v9, %v2955_v36 }
 0x3f9   :  { %v1486_v32 = vmul.f32 -1.442695, %v1039_v41 }
 0x3fa   :  { %v1579_v59 = vpop.eup %1578 }
 0x3fb   :  { %v1581_v39 = vpop.eup %1580  ;;  %v1043_v25 = vadd.f32 1.0, %v1579_v59  ;;  %1582 = vpow2.f32 %v1486_v32 }
 0x3fc   :  { %v1062_v31 = vadd.f32 1.0, %v1581_v39 }
 0x3fd   :  { %1584 = vrcp.f32 %v1043_v25  ;;  %v1055_v33 = vand.u32 2147483648, %v1043_v25  ;;  %v1053_v47 = vand.u32 2147483647, %v1043_v25  ;;  %vm1049_vm0 = vweird.f32 %v1043_v25 }
 0x3fe   :  { %1586 = vrcp.f32 %v1062_v31  ;;  %v1074_v19 = vand.u32 2147483648, %v1062_v31  ;;  %v1072_v46 = vand.u32 2147483647, %v1062_v31  ;;  %vm1068_vm1 = vweird.f32 %v1062_v31 }
 0x3ff   :  { %v1056_v24 = vor.u32 1.1754944e-38, %v1055_v33  ;;  %vm1054_vm4 = vcmp.eq.f32.partialorder %v1053_v47, 8.507059e+37 }
 0x400   :  { %v1075_v7 = vor.u32 1.1754944e-38, %v1074_v19  ;;  %vm1073_vm5 = vcmp.eq.f32.partialorder %v1072_v46, 8.507059e+37 }
 0x401   :  { %v1583_v40 = vpop.eup %1582 }
 0x402   :  { %v1082_v43 = vadd.f32 1.0, %v1583_v40 }
 0x403   :  { %v1585_v38 = vpop.eup %1584 }
 0x404   :  { %v1587_v42 = vpop.eup %1586  ;;  %v1045_v34 = vmul.f32 %v1585_v38, %v1043_v25  ;;  %1588 = vrcp.f32 %v1082_v43  ;;  %vm1050_vm14 = vweird.f32 %v1585_v38  ;;  %v1094_v27 = vand.u32 2147483648, %v1082_v43 }
 0x405   :  { %v1064_v50 = vmul.f32 %v1587_v42, %v1062_v31  ;;  %1590 = vtanh.f32 %v1038_v44  ;;  %vm1069_vm15 = vweird.f32 %v1587_v42  ;;  %vm1051_vm2 = vmor %vm1049_vm0, %vm1050_vm14  ;;  %vm1088_vm7 = vweird.f32 %v1082_v43 }
 0x406   :  { %v1046_v56 = vsub.f32 1.0, %v1045_v34  ;;  %vm1070_vm3 = vmor %vm1068_vm1, %vm1069_vm15  ;;  %v1092_v63 = vand.u32 2147483647, %v1082_v43  ;;  %v1095_v57 = vor.u32 1.1754944e-38, %v1094_v27 }
 0x407   :  { %v1065_v37 = vsub.f32 1.0, %v1064_v50 }
 0x408   :  { %v1047_v28 = vmul.f32 %v1585_v38, %v1046_v56  ;;  %vm1093_vm9 = vcmp.eq.f32.partialorder %v1092_v63, 8.507059e+37 }
 0x409   :  { %v1066_v51 = vmul.f32 %v1587_v42, %v1065_v37 }
 0x40a   :  { %v1589_v54 = vpop.eup %1588  ;;  %v1048_v18 = vadd.f32 %v1585_v38, %v1047_v28 }
 0x40b   :  { %v1067_v61 = vadd.f32 %v1587_v42, %v1066_v51  ;;  %v1084_v0 = vmul.f32 %v1589_v54, %v1082_v43  ;;  %v1591_v55 = vpop.eup %1590  ;;  %vm1089_vm6 = vweird.f32 %v1589_v54 }
 0x40c   :  { %v1052_v35 = vsel %vm1051_vm2, %v1585_v38, %v1048_v18  ;;  %vm1090_vm8 = vmor %vm1088_vm7, %vm1089_vm6 }
 0x40d   :  { %v1057_v5 = vsel %vm1054_vm4, %v1056_v24, %v1052_v35  ;;  %v1071_v1 = vsel %vm1070_vm3, %v1587_v42, %v1067_v61  ;;  %v1085_v62 = vsub.f32 1.0, %v1084_v0 }
 0x40e   :  { %v1076_v60 = vsel %vm1073_vm5, %v1075_v7, %v1071_v1  ;;  %v1102_v6 = vmul.f32 %v1591_v55, %v1057_v5 }
 0x40f   :  { %v1101_v4 = vmul.f32 %v1099_v3, %v1076_v60  ;;  %v1086_v2 = vmul.f32 %v1589_v54, %v1085_v62 }
 0x411   :  { %v2611_v11 = vadd.f32 %v1102_v6, %v1101_v4  ;;  %v1087_v45 = vadd.f32 %v1589_v54, %v1086_v2 }
 0x413   :  { %1592 = vtanh.f32 %v2611_v11  ;;  %v1091_v17 = vsel %vm1090_vm8, %v1589_v54, %v1087_v45  ;;  %v1264_v0 = vrot.slane %v2611_v11, 6 }
 0x414   :  { %v1096_v8 = vsel %vm1093_vm9, %v1095_v57, %v1091_v17 }
 0x419   :  { %v1593_v53 = vpop.eup %1592 }
 0x41a   :  { %v1105_v10 = vmul.f32 %v1593_v53, %v1096_v8 }
 0x41c   :  { %v1107_v12 = vrot.slane %v1105_v10, 2 }
 0x41e   :  { %1125 = vmatmul.f32.vlgmr.msra.gmra.mxu0 %v1107_v12  ;;  %1145 = vmatmul.f32.vlgmr.msra.gmra.mxu1 %v1107_v12 }
 0x41f   :  { %1165 = vmatmul.f32.vlgmr.msra.gmra.mxu2 %v1107_v12  ;;  %1185 = vmatmul.f32.vlgmr.msra.gmra.mxu3 %v1107_v12 }
 0x49b   :  { %v1126_v13 = vpop.f32.mrf.mxu0  ;;  %v1146_v14 = vpop.f32.mrf.mxu1 }
 0x49c   :  { %v1193_v15 = vrot.slane %v1126_v13, 4  ;;  %v1194_v16 = vrot.slane %v1146_v14, 4 }
 0x49e   :  { %v1201_v20 = vadd.f32 %v1193_v15, %v2952_v21  ;;  %v1202_v22 = vadd.f32 %v1194_v16, %v2953_v23 }
 0x4a0   :  { %v1487_v26 = vmul.f32 -1.442695, %v1201_v20  ;;  %v1488_v29 = vmul.f32 -1.442695, %v1202_v22 }
 0x4a2   :  { %1594 = vpow2.f32 %v1487_v26  ;;  %v1186_v30 = vpop.f32.mrf.mxu3  ;;  %v1166_v31 = vpop.f32.mrf.mxu2 }
 0x4a3   :  { %1596 = vpow2.f32 %v1488_v29  ;;  %v1196_v48 = vrot.slane %v1186_v30, 4  ;;  %v1195_v58 = vrot.slane %v1166_v31, 4 }
 0x4a5   :  { %v1204_v49 = vadd.f32 %v1196_v48, %v2954_v52  ;;  %v1203_v38 = vadd.f32 %v1195_v58, %v2955_v36 }
 0x4a7   :  { %v1489_v41 = vmul.f32 -1.442695, %v1204_v49 }
 0x4a8   :  { %v1595_v32 = vpop.eup %1594 }
 0x4a9   :  { %v1597_v59 = vpop.eup %1596  ;;  %v1208_v39 = vadd.f32 1.0, %v1595_v32  ;;  %1598 = vpow2.f32 %v1489_v41 }
 0x4aa   :  { %v1227_v25 = vadd.f32 1.0, %v1597_v59 }
 0x4ab   :  { %1600 = vrcp.f32 %v1208_v39  ;;  %v1220_v37 = vand.u32 2147483648, %v1208_v39  ;;  %v1218_v28 = vand.u32 2147483647, %v1208_v39  ;;  %vm1214_vm12 = vweird.f32 %v1208_v39 }
 0x4ac   :  { %1602 = vrcp.f32 %v1227_v25  ;;  %v1239_v33 = vand.u32 2147483648, %v1227_v25  ;;  %v1237_v51 = vand.u32 2147483647, %v1227_v25  ;;  %vm1233_vm13 = vweird.f32 %v1227_v25 }
 0x4ad   :  { %v1221_v18 = vor.u32 1.1754944e-38, %v1220_v37  ;;  %vm1219_vm0 = vcmp.eq.f32.partialorder %v1218_v28, 8.507059e+37 }
 0x4ae   :  { %v1240_v3 = vor.u32 1.1754944e-38, %v1239_v33  ;;  %vm1238_vm1 = vcmp.eq.f32.partialorder %v1237_v51, 8.507059e+37 }
 0x4af   :  { %v1599_v9 = vpop.eup %1598 }
 0x4b0   :  { %v1247_v40 = vadd.f32 1.0, %v1599_v9 }
 0x4b1   :  { %v1601_v43 = vpop.eup %1600 }
 0x4b2   :  { %v1603_v44 = vpop.eup %1602  ;;  %v1210_v42 = vmul.f32 %v1601_v43, %v1208_v39  ;;  %1604 = vrcp.f32 %v1247_v40  ;;  %vm1215_vm10 = vweird.f32 %v1601_v43  ;;  %v1259_v11 = vand.u32 2147483648, %v1247_v40 }
 0x4b3   :  { %v1229_v34 = vmul.f32 %v1603_v44, %v1227_v25  ;;  %1606 = vtanh.f32 %v1203_v38  ;;  %vm1234_vm11 = vweird.f32 %v1603_v44  ;;  %vm1216_vm14 = vmor %vm1214_vm12, %vm1215_vm10  ;;  %vm1253_vm3 = vweird.f32 %v1247_v40 }
 0x4b4   :  { %v1211_v50 = vsub.f32 1.0, %v1210_v42  ;;  %vm1235_vm15 = vmor %vm1233_vm13, %vm1234_vm11  ;;  %v1257_v27 = vand.u32 2147483647, %v1247_v40  ;;  %v1260_v17 = vor.u32 1.1754944e-38, %v1259_v11 }
 0x4b5   :  { %v1230_v56 = vsub.f32 1.0, %v1229_v34 }
 0x4b6   :  { %v1212_v19 = vmul.f32 %v1601_v43, %v1211_v50  ;;  %vm1258_vm5 = vcmp.eq.f32.partialorder %v1257_v27, 8.507059e+37 }
 0x4b7   :  { %v1231_v47 = vmul.f32 %v1603_v44, %v1230_v56 }
 0x4b8   :  { %v1605_v46 = vpop.eup %1604  ;;  %v1213_v54 = vadd.f32 %v1601_v43, %v1212_v19 }
 0x4b9   :  { %v1232_v24 = vadd.f32 %v1603_v44, %v1231_v47  ;;  %v1249_v61 = vmul.f32 %v1605_v46, %v1247_v40  ;;  %v1607_v35 = vpop.eup %1606  ;;  %vm1254_vm2 = vweird.f32 %v1605_v46 }
 0x4ba   :  { %v1217_v7 = vsel %vm1216_vm14, %v1601_v43, %v1213_v54  ;;  %vm1255_vm4 = vmor %vm1253_vm3, %vm1254_vm2  ;;  %vm1441_vm2 = vcmask 1047558   ;;  %vm1450_vm3 = vcmask 7174  }
 0x4bb   :  { %v1222_v55 = vsel %vm1219_vm0, %v1221_v18, %v1217_v7  ;;  %v1236_v5 = vsel %vm1235_vm15, %v1603_v44, %v1232_v24  ;;  %v1250_v1 = vsub.f32 1.0, %v1249_v61 }
 0x4bc   :  { %v1241_v62 = vsel %vm1238_vm1, %v1240_v3, %v1236_v5  ;;  %v1267_v60 = vmul.f32 %v1607_v35, %v1222_v55 }
 0x4bd   :  { %v1266_v6 = vmul.f32 %v1264_v0, %v1241_v62  ;;  %v1251_v4 = vmul.f32 %v1605_v46, %v1250_v1 }
 0x4bf   :  { %v2619_v2 = vadd.f32 %v1267_v60, %v1266_v6  ;;  %v1252_v45 = vadd.f32 %v1605_v46, %v1251_v4 }
 0x4c1   :  { %1608 = vtanh.f32 %v2619_v2  ;;  %v1256_v63 = vsel %vm1255_vm4, %v1605_v46, %v1252_v45  ;;  %v1429_v46 = vrot.slane %v2619_v2, 6  ;;  %v1496_v45 = vld [vmem:[%s2637_s4] ss:$0 sm:$0xff] }
 0x4c2   :  { %v1261_v53 = vsel %vm1258_vm5, %v1260_v17, %v1256_v63 }
 0x4c7   :  { %v1609_v57 = vpop.eup %1608 }
 0x4c8   :  { %v1270_v8 = vmul.f32 %v1609_v57, %v1261_v53  ;;  %v1497_v53 = vld [vmem:[#allocation2] ss:$0 sm:$0xff] }
 0x4ca   :  { %v1272_v10 = vrot.slane %v1270_v8, 4 }
 0x4cc   :  { %1290 = vmatmul.f32.vlgmr.msrb.gmra.mxu0 %v1272_v10  ;;  %1310 = vmatmul.f32.vlgmr.msrb.gmra.mxu1 %v1272_v10 }
 0x4cd   :  { %1330 = vmatmul.f32.vlgmr.msrb.gmra.mxu2 %v1272_v10  ;;  %1350 = vmatmul.f32.vlgmr.msrb.gmra.mxu3 %v1272_v10 }
 0x549   :  { %v1291_v12 = vpop.f32.mrf.mxu0  ;;  %v1311_v13 = vpop.f32.mrf.mxu1 }
 0x54a   :  { %v1358_v14 = vrot.slane %v1291_v12, 2  ;;  %v1359_v15 = vrot.slane %v1311_v13, 2 }
 0x54c   :  { %v1366_v16 = vadd.f32 %v1358_v14, %v2952_v21  ;;  %v1367_v20 = vadd.f32 %v1359_v15, %v2953_v23 }
 0x54e   :  { %v1490_v22 = vmul.f32 -1.442695, %v1366_v16  ;;  %v1491_v26 = vmul.f32 -1.442695, %v1367_v20 }
 0x550   :  { %1610 = vpow2.f32 %v1490_v22  ;;  %v1351_v29 = vpop.f32.mrf.mxu3  ;;  %v1331_v25 = vpop.f32.mrf.mxu2 }
 0x551   :  { %1612 = vpow2.f32 %v1491_v26  ;;  %v1361_v30 = vrot.slane %v1351_v29, 2  ;;  %v1360_v21 = vrot.slane %v1331_v25, 2 }
 0x553   :  { %v1369_v48 = vadd.f32 %v1361_v30, %v2954_v52  ;;  %v1368_v9 = vadd.f32 %v1360_v21, %v2955_v36 }
 0x555   :  { %v1492_v49 = vmul.f32 -1.442695, %v1369_v48 }
 0x556   :  { %v1611_v41 = vpop.eup %1610 }
 0x557   :  { %v1613_v32 = vpop.eup %1612  ;;  %v1373_v59 = vadd.f32 1.0, %v1611_v41  ;;  %1614 = vpow2.f32 %v1492_v49 }
 0x558   :  { %v1392_v39 = vadd.f32 1.0, %v1613_v32 }
 0x559   :  { %1616 = vrcp.f32 %v1373_v59  ;;  %v1385_v42 = vand.u32 2147483648, %v1373_v59  ;;  %v1383_v56 = vand.u32 2147483647, %v1373_v59  ;;  %vm1379_vm8 = vweird.f32 %v1373_v59 }
 0x55a   :  { %1618 = vrcp.f32 %v1392_v39  ;;  %v1404_v34 = vand.u32 2147483648, %v1392_v39  ;;  %v1402_v33 = vand.u32 2147483647, %v1392_v39  ;;  %vm1398_vm9 = vweird.f32 %v1392_v39 }
 0x55b   :  { %v1386_v36 = vor.u32 1.1754944e-38, %v1385_v42  ;;  %vm1384_vm12 = vcmp.eq.f32.partialorder %v1383_v56, 8.507059e+37 }
 0x55c   :  { %v1405_v54 = vor.u32 1.1754944e-38, %v1404_v34  ;;  %vm1403_vm13 = vcmp.eq.f32.partialorder %v1402_v33, 8.507059e+37 }
 0x55d   :  { %v1615_v31 = vpop.eup %1614 }
 0x55e   :  { %v1412_v23 = vadd.f32 1.0, %v1615_v31 }
 0x55f   :  { %v1617_v58 = vpop.eup %1616 }
 0x560   :  { %v1619_v40 = vpop.eup %1618  ;;  %v1375_v43 = vmul.f32 %v1617_v58, %v1373_v59  ;;  %1620 = vrcp.f32 %v1412_v23  ;;  %vm1380_vm6 = vweird.f32 %v1617_v58  ;;  %v1424_v60 = vand.u32 2147483648, %v1412_v23 }
 0x561   :  { %v1394_v38 = vmul.f32 %v1619_v40, %v1392_v39  ;;  %1622 = vtanh.f32 %v1368_v9  ;;  %vm1399_vm7 = vweird.f32 %v1619_v40  ;;  %vm1381_vm10 = vmor %vm1379_vm8, %vm1380_vm6  ;;  %vm1418_vm15 = vweird.f32 %v1412_v23 }
 0x562   :  { %v1376_v52 = vsub.f32 1.0, %v1375_v43  ;;  %vm1400_vm11 = vmor %vm1398_vm9, %vm1399_vm7  ;;  %v1422_v6 = vand.u32 2147483647, %v1412_v23  ;;  %v1425_v2 = vor.u32 1.1754944e-38, %v1424_v60 }
 0x563   :  { %v1395_v44 = vsub.f32 1.0, %v1394_v38 }
 0x564   :  { %v1377_v50 = vmul.f32 %v1617_v58, %v1376_v52  ;;  %vm1423_vm1 = vcmp.eq.f32.partialorder %v1422_v6, 8.507059e+37 }
 0x565   :  { %v1396_v37 = vmul.f32 %v1619_v40, %v1395_v44 }
 0x566   :  { %v1621_v19 = vpop.eup %1620  ;;  %v1378_v28 = vadd.f32 %v1617_v58, %v1377_v50 }
 0x567   :  { %v1397_v47 = vadd.f32 %v1619_v40, %v1396_v37  ;;  %v1414_v51 = vmul.f32 %v1621_v19, %v1412_v23  ;;  %v1623_v24 = vpop.eup %1622  ;;  %vm1419_vm14 = vweird.f32 %v1621_v19 }
 0x568   :  { %v1382_v18 = vsel %vm1381_vm10, %v1617_v58, %v1378_v28  ;;  %vm1420_vm0 = vmor %vm1418_vm15, %vm1419_vm14 }
 0x569   :  { %v1387_v61 = vsel %vm1384_vm12, %v1386_v36, %v1382_v18  ;;  %v1401_v0 = vsel %vm1400_vm11, %v1619_v40, %v1397_v47  ;;  %v1415_v3 = vsub.f32 1.0, %v1414_v51 }
 0x56a   :  { %v1432_v7 = vmul.f32 %v1623_v24, %v1387_v61  ;;  %v1406_v35 = vsel %vm1403_vm13, %v1405_v54, %v1401_v0 }
 0x56b   :  { %v1416_v55 = vmul.f32 %v1621_v19, %v1415_v3  ;;  %v1431_v5 = vmul.f32 %v1429_v46, %v1406_v35 }
 0x56d   :  { %v1433_v1 = vadd.f32 %v1432_v7, %v1431_v5  ;;  %v1417_v62 = vadd.f32 %v1621_v19, %v1416_v55 }
 0x56f   :  { %1624 = vtanh.f32 %v1433_v1  ;;  %v1421_v4 = vsel %vm1420_vm0, %v1621_v19, %v1417_v62 }
 0x570   :  { %v1426_v27 = vsel %vm1423_vm1, %v1425_v2, %v1421_v4 }
 0x575   :  { %v1625_v11 = vpop.eup %1624 }
 0x576   :  { %v1435_v63 = vmul.f32 %v1625_v11, %v1426_v27 }
 0x578   :  { %v1440_v17 = vmul.f32 %v1496_v45, %v1435_v63 }
 0x57a   :  { %v1442_v57 = vsel %vm1441_vm2, %v1440_v17, 0.0 }
 0x57b   :  { %1443 = vadd.xlane.f32.xlu0 %v1442_v57 }
 0x5ee   :  { %v1444_v8 = vpop.xlane.xlu0 %1443 }
 0x5ef   :  { %v1449_v10 = vadd.f32 %v1497_v53, %v1444_v8 }
 0x5f1   :  { %1451 = vst.msk [vmem:[%s2639_s6 - $0x6] sm:$0xc0] %vm1450_vm3, %v1449_v10 }
 0x5f2   :  { %1456 = vsyncpa [#allocation4], 1 }

</bundles_post_ra>
